<compile_context>
chip_gen: v7x
topology: tpu7x:2x2x1
jax: 0.10.0
libtpu: 0.0.40
codegen_flags: <defaults>
</compile_context>

<pallas_src>
import functools
import math

import jax
import jax.numpy as jnp
import numpy as np
from jax.experimental import pallas as pl
from jax.experimental.pallas import tpu as pltpu

LRELU_SLOPE = 0.01   # nn.LeakyReLU default
BN_EPS = 1e-5        # nn.BatchNorm1d default
LN_EPS = 1e-5        # nn.LayerNorm default


def _layer_norm(x, g, b):
    mu = jnp.mean(x, axis=-1, keepdims=True)
    var = jnp.mean((x - mu) ** 2, axis=-1, keepdims=True)
    return (x - mu) * jax.lax.rsqrt(var + LN_EPS) * g + b


# -----------------------------------------------------------------------------
# Single fused kernel: lin_first (layer 0 only) + encoder layer (every step)
# + lin_in (last layer only).  Scratch h_ref keeps activations resident in VMEM.
# -----------------------------------------------------------------------------
def _fused_kernel(x_ref, mask_ref, wf_ref, bf_ref,
                  wqkv_ref, bqkv_ref, wo_ref, bo_ref, g1_ref, be1_ref,
                  w1_ref, b1_ref, w2_ref, b2_ref, g2_ref, be2_ref,
                  win_ref, bin_ref, o_ref, h_ref, *, B, N, heads):
    l = pl.program_id(0)
    nl = pl.num_programs(0)
    D = h_ref.shape[-1]
    dh = D // heads

    @pl.when(l == 0)
    def _():
        # lin_first: Linear + folded BatchNorm(eval) + LeakyReLU
        y = jnp.dot(x_ref[...], wf_ref[...],
                    preferred_element_type=jnp.float32) + bf_ref[...]
        h_ref[...] = jnp.where(y >= 0.0, y, LRELU_SLOPE * y)

    x2 = h_ref[...]                                   # (B*N, D), VMEM resident
    # Fused Q|K|V projection in one MXU pass (1/sqrt(dh) folded into q weights).
    qkv = jnp.dot(x2, wqkv_ref[0],
                  preferred_element_type=jnp.float32) + bqkv_ref[0]

    o_rows = []
    for b in range(B):                                # static unroll (small B*heads)
        head_outs = []
        for h in range(heads):
            r0 = b * N
            q_bh = qkv[r0:r0 + N, h * dh:(h + 1) * dh]
            k_bh = qkv[r0:r0 + N, D + h * dh:D + (h + 1) * dh]
            v_bh = qkv[r0:r0 + N, 2 * D + h * dh:2 * D + (h + 1) * dh]
            s = jnp.dot(q_bh, k_bh.T, preferred_element_type=jnp.float32)
            # Faithful reproduction of the PyTorch mask_fc.repeat(heads,1,1)
            # consumption quirk: (batch b, head h) uses mask[(b*heads + h) % B].
            s = s + mask_ref[(b * heads + h) % B]
            s = s - jnp.max(s, axis=-1, keepdims=True)
            p = jnp.exp(s)
            p = p * pl.reciprocal(jnp.sum(p, axis=-1, keepdims=True), approx=True)
            head_outs.append(jnp.dot(p, v_bh, preferred_element_type=jnp.float32))
        o_rows.append(jnp.concatenate(head_outs, axis=-1))
    attn = jnp.concatenate(o_rows, axis=0)            # (B*N, D)
    attn = jnp.dot(attn, wo_ref[0],
                   preferred_element_type=jnp.float32) + bo_ref[0]

    # TODO(synk): dropout inside the encoder layer is identity (eval-mode forward).
    x1 = _layer_norm(x2 + attn, g1_ref[0], be1_ref[0])
    ff = jnp.dot(x1, w1_ref[0], preferred_element_type=jnp.float32) + b1_ref[0]
    ff = jnp.maximum(ff, 0.0)                         # encoder-layer default relu
    ff = jnp.dot(ff, w2_ref[0], preferred_element_type=jnp.float32) + b2_ref[0]
    h_new = _layer_norm(x1 + ff, g2_ref[0], be2_ref[0])
    h_ref[...] = h_new                                # carry to next layer step

    @pl.when(l == nl - 1)
    def _():
        # lin_in: Linear + folded BatchNorm(eval) + LeakyReLU (single HBM store)
        y = jnp.dot(h_new, win_ref[...],
                    preferred_element_type=jnp.float32) + bin_ref[...]
        o_ref[...] = jnp.where(y >= 0.0, y, LRELU_SLOPE * y)


# -----------------------------------------------------------------------------
# Full forward: all host work is cheap parameter folding / stacking; the whole
# hot path is the single pallas_call above.
# -----------------------------------------------------------------------------
def detour_forward(x, adj_fc, P, *, heads, num_nodes, nlayers):
    B = adj_fc.shape[0]
    D = P["w_first"].shape[1]
    out_ch = P["w_in"].shape[1]
    F_in = x.shape[-1]
    M = B * num_nodes
    dh = D // heads
    scale = 1.0 / math.sqrt(dh)

    # Fold eval-mode BatchNorm into the adjacent Linear (w' = w*s, b' = (b-mu)*s+beta).
    s1 = P["bn1_g"] * jax.lax.rsqrt(P["bn1_var"] + BN_EPS)
    wf = P["w_first"] * s1[None, :]
    bf = ((P["b_first"] - P["bn1_mean"]) * s1 + P["bn1_b"]).reshape(1, -1)
    s2 = P["bn2_g"] * jax.lax.rsqrt(P["bn2_var"] + BN_EPS)
    wi = P["w_in"] * s2[None, :]
    bi = ((P["b_in"] - P["bn2_mean"]) * s2 + P["bn2_b"]).reshape(1, -1)

    # Stack per-layer weights along a leading nlayers axis; fuse QKV and fold the
    # attention scale into the Q projection.
    stk = lambda f: jnp.stack([f(L) for L in P["layers"]], axis=0)
    wqkv = stk(lambda L: jnp.concatenate([L["wq"] * scale, L["wk"], L["wv"]], axis=1))
    bqkv = stk(lambda L: jnp.concatenate([L["bq"] * scale, L["bk"], L["bv"]]).reshape(1, -1))
    wo = stk(lambda L: L["wo"]);   bo = stk(lambda L: L["bo"].reshape(1, -1))
    g1 = stk(lambda L: L["g1"].reshape(1, -1)); be1 = stk(lambda L: L["be1"].reshape(1, -1))
    w1 = stk(lambda L: L["w1"]);   b1 = stk(lambda L: L["b1"].reshape(1, -1))
    w2 = stk(lambda L: L["w2"]);   b2 = stk(lambda L: L["b2"].reshape(1, -1))
    g2 = stk(lambda L: L["g2"].reshape(1, -1)); be2 = stk(lambda L: L["be2"].reshape(1, -1))
    H = w1.shape[-1]

    # Per-batch additive mask (0 where edge or diagonal, -inf elsewhere); NOT
    # expanded per-head in HBM — the head/batch quirk is applied inside the kernel.
    eye = jnp.eye(num_nodes, dtype=bool)
    adj = jnp.logical_or(adj_fc, eye[None])
    mask = jnp.where(adj, 0.0, -jnp.inf).astype(jnp.float32)       # (B, N, N)

    kern = functools.partial(_fused_kernel, B=B, N=num_nodes, heads=heads)

    c2 = lambda shp: pl.BlockSpec(shp, lambda l: (0, 0))            # layer-invariant
    c3 = lambda shp: pl.BlockSpec(shp, lambda l: (0, 0, 0))         # layer-invariant
    L3 = lambda shp: pl.BlockSpec(shp, lambda l: (l, 0, 0))         # per-layer stream

    in_specs = [
        c2((M, F_in)), c3((B, num_nodes, num_nodes)),
        c2((F_in, D)), c2((1, D)),
        L3((1, D, 3 * D)), L3((1, 1, 3 * D)),
        L3((1, D, D)), L3((1, 1, D)),
        L3((1, 1, D)), L3((1, 1, D)),
        L3((1, D, H)), L3((1, 1, H)),
        L3((1, H, D)), L3((1, 1, D)),
        L3((1, 1, D)), L3((1, 1, D)),
        c2((D, out_ch)), c2((1, out_ch)),
    ]
    return pl.pallas_call(
        kern,
        grid=(nlayers,),
        in_specs=in_specs,
        out_specs=pl.BlockSpec((M, out_ch), lambda l: (0, 0)),
        out_shape=jax.ShapeDtypeStruct((M, out_ch), jnp.float32),
        scratch_shapes=[pltpu.VMEM((M, D), jnp.float32)],
        compiler_params=pltpu.CompilerParams(dimension_semantics=("arbitrary",)),
    )(x, mask, wf, bf, wqkv, bqkv, wo, bo, g1, be1, w1, b1, w2, b2, g2, be2, wi, bi)


# -----------------------------------------------------------------------------
# Pure-JAX reference (same eval-mode semantics, un-folded params) for sanity check.
# -----------------------------------------------------------------------------
def ref_forward(x, adj_fc, P, heads, num_nodes, nlayers):
    def lin_bn(t, w, b, mu, var, g, be):
        y = t @ w + b
        y = (y - mu) / jnp.sqrt(var + BN_EPS) * g + be
        return jnp.where(y >= 0, y, LRELU_SLOPE * y)

    def ln(t, g, b):
        mu = t.mean(-1, keepdims=True)
        var = ((t - mu) ** 2).mean(-1, keepdims=True)
        return (t - mu) / jnp.sqrt(var + LN_EPS) * g + b

    h = lin_bn(x, P["w_first"], P["b_first"], P["bn1_mean"], P["bn1_var"],
               P["bn1_g"], P["bn1_b"])
    B = adj_fc.shape[0]
    D = P["w_first"].shape[1]
    h = h.reshape(B, num_nodes, D)
    eye = jnp.eye(num_nodes, dtype=bool)
    adj = jnp.logical_or(adj_fc, eye[None])
    base = jnp.where(adj, 0.0, -jnp.inf).astype(jnp.float32)
    mask_bh = jnp.tile(base, (heads, 1, 1)).reshape(B, heads, num_nodes, num_nodes)
    dh = D // heads
    for li in range(nlayers):
        L = P["layers"][li]
        q = h @ L["wq"] + L["bq"]
        k = h @ L["wk"] + L["bk"]
        v = h @ L["wv"] + L["bv"]
        split = lambda t: t.reshape(B, num_nodes, heads, dh).transpose(0, 2, 1, 3)
        qh, kh, vh = split(q), split(k), split(v)
        s = jnp.einsum("bhqd,bhkd->bhqk", qh, kh) / math.sqrt(dh) + mask_bh
        p = jax.nn.softmax(s, axis=-1)
        o = jnp.einsum("bhqk,bhkd->bhqd", p, vh).transpose(0, 2, 1, 3)
        o = o.reshape(B, num_nodes, D) @ L["wo"] + L["bo"]
        h1 = ln(h + o, L["g1"], L["be1"])
        ff = jnp.maximum(h1 @ L["w1"] + L["b1"], 0.0) @ L["w2"] + L["b2"]
        h = ln(h1 + ff, L["g2"], L["be2"])
    h = h.reshape(B * num_nodes, D)
    return lin_bn(h, P["w_in"], P["b_in"], P["bn2_mean"], P["bn2_var"],
                  P["bn2_g"], P["bn2_b"])


# -----------------------------------------------------------------------------
# Deterministic parameter initialization (synthetic, no checkpoint).
# -----------------------------------------------------------------------------
def init_params(key, org_in_dim, in_dim, out_channel, hid_dim, nlayers):
    ks = iter(jax.random.split(key, 64))
    nrm = lambda shape, s=0.2: (s * jax.random.normal(next(ks), shape)).astype(jnp.float32)
    pos = lambda shape: (0.5 + jax.random.uniform(next(ks), shape)).astype(jnp.float32)
    P = dict(
        w_first=nrm((org_in_dim, in_dim)), b_first=nrm((in_dim,)),
        bn1_mean=nrm((in_dim,)), bn1_var=pos((in_dim,)),
        bn1_g=pos((in_dim,)), bn1_b=nrm((in_dim,)),
        w_in=nrm((in_dim, out_channel)), b_in=nrm((out_channel,)),
        bn2_mean=nrm((out_channel,)), bn2_var=pos((out_channel,)),
        bn2_g=pos((out_channel,)), bn2_b=nrm((out_channel,)),
        layers=[],
    )
    for _ in range(nlayers):
        P["layers"].append(dict(
            wq=nrm((in_dim, in_dim)), wk=nrm((in_dim, in_dim)), wv=nrm((in_dim, in_dim)),
            bq=nrm((in_dim,)), bk=nrm((in_dim,)), bv=nrm((in_dim,)),
            wo=nrm((in_dim, in_dim)), bo=nrm((in_dim,)),
            g1=pos((in_dim,)), be1=nrm((in_dim,)),
            w1=nrm((in_dim, hid_dim)), b1=nrm((hid_dim,)),
            w2=nrm((hid_dim, in_dim)), b2=nrm((in_dim,)),
            g2=pos((in_dim,)), be2=nrm((in_dim,)),
        ))
    return P


if __name__ == "__main__":
    heads = 2
    nlayers = 2          # exercise the layer grid axis + VMEM-resident carry
    num_nodes = 8
    org_in_dim = 16
    out_channel = 8
    hid_dim = 32
    B = 2

    in_dim = org_in_dim
    if in_dim % heads != 0:
        in_dim = in_dim + heads - in_dim % heads

    key = jax.random.PRNGKey(0)
    kx, kadj, kp = jax.random.split(key, 3)
    x = jax.random.normal(kx, (B * num_nodes, org_in_dim), dtype=jnp.float32)
    adj_fc = jax.random.bernoulli(kadj, 0.4, (B, num_nodes, num_nodes))
    params = init_params(kp, org_in_dim, in_dim, out_channel, hid_dim, nlayers)

    out = detour_forward(x, adj_fc, params,
                         heads=heads, num_nodes=num_nodes, nlayers=nlayers)
    out = jax.block_until_ready(out)

    ref = ref_forward(x, adj_fc, params, heads, num_nodes, nlayers)
    assert out.shape == (B * num_nodes, out_channel)
    assert bool(jnp.all(jnp.isfinite(out)))
    np.testing.assert_allclose(np.asarray(out), np.asarray(ref), rtol=2e-2, atol=2e-2)
    print("KERNEL_OK")
</pallas_src>

<mosaic_0001>
module attributes {stable_mosaic.version = 11 : i64} {
  func.func @_fused_kernel(%arg0: i32, %arg1: memref<16x16xf32, #tpu.memory_space<vmem>>, %arg2: memref<2x8x8xf32, #tpu.memory_space<vmem>>, %arg3: memref<16x16xf32, #tpu.memory_space<vmem>>, %arg4: memref<1x16xf32, #tpu.memory_space<vmem>>, %arg5: memref<1x16x48xf32, #tpu.memory_space<vmem>>, %arg6: memref<1x1x48xf32, #tpu.memory_space<vmem>>, %arg7: memref<1x16x16xf32, #tpu.memory_space<vmem>>, %arg8: memref<1x1x16xf32, #tpu.memory_space<vmem>>, %arg9: memref<1x1x16xf32, #tpu.memory_space<vmem>>, %arg10: memref<1x1x16xf32, #tpu.memory_space<vmem>>, %arg11: memref<1x16x32xf32, #tpu.memory_space<vmem>>, %arg12: memref<1x1x32xf32, #tpu.memory_space<vmem>>, %arg13: memref<1x32x16xf32, #tpu.memory_space<vmem>>, %arg14: memref<1x1x16xf32, #tpu.memory_space<vmem>>, %arg15: memref<1x1x16xf32, #tpu.memory_space<vmem>>, %arg16: memref<1x1x16xf32, #tpu.memory_space<vmem>>, %arg17: memref<16x8xf32, #tpu.memory_space<vmem>>, %arg18: memref<1x8xf32, #tpu.memory_space<vmem>>, %arg19: memref<16x8xf32, #tpu.memory_space<vmem>>, %arg20: memref<16x16xf32, #tpu.memory_space<vmem>>) attributes {dimension_semantics = [#tpu.dimension_semantics<arbitrary>], iteration_bounds = array<i64: 2>, scalar_prefetch = 0 : i64, scratch_operands = 1 : i64, tpu.core_type = #tpu.core_type<tc>, window_params = [{pipeline_mode = #tpu.pipeline_mode<synchronous>, transform_indices = @transform_0, window_bounds = array<i64: 16, 16>}, {pipeline_mode = #tpu.pipeline_mode<synchronous>, transform_indices = @transform_1, window_bounds = array<i64: 2, 8, 8>}, {pipeline_mode = #tpu.pipeline_mode<synchronous>, transform_indices = @transform_2, window_bounds = array<i64: 16, 16>}, {pipeline_mode = #tpu.pipeline_mode<synchronous>, transform_indices = @transform_3, window_bounds = array<i64: 1, 16>}, {transform_indices = @transform_4, window_bounds = array<i64: 1, 16, 48>}, {transform_indices = @transform_5, window_bounds = array<i64: 1, 1, 48>}, {transform_indices = @transform_6, window_bounds = array<i64: 1, 16, 16>}, {transform_indices = @transform_7, window_bounds = array<i64: 1, 1, 16>}, {transform_indices = @transform_8, window_bounds = array<i64: 1, 1, 16>}, {transform_indices = @transform_9, window_bounds = array<i64: 1, 1, 16>}, {transform_indices = @transform_10, window_bounds = array<i64: 1, 16, 32>}, {transform_indices = @transform_11, window_bounds = array<i64: 1, 1, 32>}, {transform_indices = @transform_12, window_bounds = array<i64: 1, 32, 16>}, {transform_indices = @transform_13, window_bounds = array<i64: 1, 1, 16>}, {transform_indices = @transform_14, window_bounds = array<i64: 1, 1, 16>}, {transform_indices = @transform_15, window_bounds = array<i64: 1, 1, 16>}, {pipeline_mode = #tpu.pipeline_mode<synchronous>, transform_indices = @transform_16, window_bounds = array<i64: 16, 8>}, {pipeline_mode = #tpu.pipeline_mode<synchronous>, transform_indices = @transform_17, window_bounds = array<i64: 1, 8>}, {pipeline_mode = #tpu.pipeline_mode<synchronous>, transform_indices = @transform_18, window_bounds = array<i64: 16, 8>}]} {
    %c0_i32 = arith.constant 0 : i32
    %0 = arith.cmpi eq, %arg0, %c0_i32 : i32
    %1 = arith.extui %0 : i1 to i32
    %c0_i32_0 = arith.constant 0 : i32
    %2 = arith.cmpi ne, %1, %c0_i32_0 : i32
    scf.if %2 {
      %c0_82 = arith.constant 0 : index
      %c0_83 = arith.constant 0 : index
      %171 = vector.load %arg1[%c0_82, %c0_83] : memref<16x16xf32, #tpu.memory_space<vmem>>, vector<16x16xf32>
      %c0_84 = arith.constant 0 : index
      %c0_85 = arith.constant 0 : index
      %172 = vector.load %arg3[%c0_84, %c0_85] : memref<16x16xf32, #tpu.memory_space<vmem>>, vector<16x16xf32>
      %cst_86 = arith.constant dense<0.000000e+00> : vector<16x16xf32>
      %173 = tpu.matmul %171, %172, %cst_86 {dimension_numbers = #tpu.dot_dimension_numbers<[1], [0], [0], [1], [0, 0, 1, 1], [], []>} : vector<16x16xf32>, vector<16x16xf32>, vector<16x16xf32> -> vector<16x16xf32>
      %c0_87 = arith.constant 0 : index
      %c0_88 = arith.constant 0 : index
      %174 = vector.load %arg4[%c0_87, %c0_88] : memref<1x16xf32, #tpu.memory_space<vmem>>, vector<1x16xf32>
      %175 = vector.broadcast %174 : vector<1x16xf32> to vector<16x16xf32>
      %176 = arith.addf %173, %175 : vector<16x16xf32>
      %cst_89 = arith.constant 0.000000e+00 : f32
      %177 = vector.broadcast %cst_89 : f32 to vector<16x16xf32>
      %178 = arith.cmpf oge, %176, %177 : vector<16x16xf32>
      %cst_90 = arith.constant 0.00999999977 : f32
      %179 = vector.broadcast %cst_90 : f32 to vector<16x16xf32>
      %180 = arith.mulf %179, %176 : vector<16x16xf32>
      %181 = arith.select %178, %176, %180 : vector<16x16xi1>, vector<16x16xf32>
      %c0_91 = arith.constant 0 : index
      %c0_92 = arith.constant 0 : index
      %182 = vector.load %arg20[%c0_91, %c0_92] : memref<16x16xf32, #tpu.memory_space<vmem>>, vector<16x16xf32>
      tpu.vector_store %arg20[%c0_91, %c0_92], %181 {strides = array<i32>} : memref<16x16xf32, #tpu.memory_space<vmem>>, vector<16x16xf32>,
    } else {
    }
    %c0 = arith.constant 0 : index
    %c0_1 = arith.constant 0 : index
    %3 = vector.load %arg20[%c0, %c0_1] : memref<16x16xf32, #tpu.memory_space<vmem>>, vector<16x16xf32>
    %c0_2 = arith.constant 0 : index
    %c0_3 = arith.constant 0 : index
    %c0_4 = arith.constant 0 : index
    %4 = vector.load %arg5[%c0_2, %c0_3, %c0_4] : memref<1x16x48xf32, #tpu.memory_space<vmem>>, vector<1x16x48xf32>
    %5 = vector.shape_cast %4 : vector<1x16x48xf32> to vector<16x48xf32>
    %cst = arith.constant dense<0.000000e+00> : vector<16x48xf32>
    %6 = tpu.matmul %3, %5, %cst {dimension_numbers = #tpu.dot_dimension_numbers<[1], [0], [0], [1], [0, 0, 1, 1], [], []>} : vector<16x16xf32>, vector<16x48xf32>, vector<16x48xf32> -> vector<16x48xf32>
    %c0_5 = arith.constant 0 : index
    %c0_6 = arith.constant 0 : index
    %c0_7 = arith.constant 0 : index
    %7 = vector.load %arg6[%c0_5, %c0_6, %c0_7] : memref<1x1x48xf32, #tpu.memory_space<vmem>>, vector<1x1x48xf32>
    %8 = vector.shape_cast %7 : vector<1x1x48xf32> to vector<1x48xf32>
    %9 = vector.broadcast %8 : vector<1x48xf32> to vector<16x48xf32>
    %10 = arith.addf %6, %9 : vector<16x48xf32>
    %11 = vector.extract_strided_slice %10 {offsets = [0, 0], sizes = [8, 8], strides = [1, 1]} : vector<16x48xf32> to vector<8x8xf32>
    %12 = vector.extract_strided_slice %10 {offsets = [0, 16], sizes = [8, 8], strides = [1, 1]} : vector<16x48xf32> to vector<8x8xf32>
    %13 = vector.extract_strided_slice %10 {offsets = [0, 32], sizes = [8, 8], strides = [1, 1]} : vector<16x48xf32> to vector<8x8xf32>
    %14 = tpu.transpose %12, [1, 0] : vector<8x8xf32> -> vector<8x8xf32>
    %cst_8 = arith.constant dense<0.000000e+00> : vector<8x8xf32>
    %15 = tpu.matmul %11, %14, %cst_8 {dimension_numbers = #tpu.dot_dimension_numbers<[1], [0], [0], [1], [0, 0, 1, 1], [], []>} : vector<8x8xf32>, vector<8x8xf32>, vector<8x8xf32> -> vector<8x8xf32>
    %c0_9 = arith.constant 0 : index
    %c0_10 = arith.constant 0 : index
    %c0_11 = arith.constant 0 : index
    %16 = vector.load %arg2[%c0_9, %c0_10, %c0_11] : memref<2x8x8xf32, #tpu.memory_space<vmem>>, vector<1x8x8xf32>
    %17 = vector.shape_cast %16 : vector<1x8x8xf32> to vector<8x8xf32>
    %18 = arith.addf %15, %17 : vector<8x8xf32>
    %cst_12 = arith.constant dense<0xFF800000> : vector<8xf32>
    %19 = vector.multi_reduction <maximumf>, %18, %cst_12 [1] : vector<8x8xf32> to vector<8xf32>
    %20 = vector.shape_cast %19 : vector<8xf32> to vector<8x1xf32>
    %21 = vector.broadcast %20 : vector<8x1xf32> to vector<8x8xf32>
    %22 = arith.subf %18, %21 : vector<8x8xf32>
    %23 = math.exp %22 : vector<8x8xf32>
    %cst_13 = arith.constant dense<0.000000e+00> : vector<8xf32>
    %24 = vector.multi_reduction <add>, %23, %cst_13 [1] : vector<8x8xf32> to vector<8xf32>
    %25 = vector.shape_cast %24 : vector<8xf32> to vector<8x1xf32>
    %26 = tpu.reciprocal %25 {approx = true} : vector<8x1xf32> -> vector<8x1xf32>
    %27 = vector.broadcast %26 : vector<8x1xf32> to vector<8x8xf32>
    %28 = arith.mulf %23, %27 : vector<8x8xf32>
    %cst_14 = arith.constant dense<0.000000e+00> : vector<8x8xf32>
    %29 = tpu.matmul %28, %13, %cst_14 {dimension_numbers = #tpu.dot_dimension_numbers<[1], [0], [0], [1], [0, 0, 1, 1], [], []>} : vector<8x8xf32>, vector<8x8xf32>, vector<8x8xf32> -> vector<8x8xf32>
    %30 = vector.extract_strided_slice %10 {offsets = [0, 8], sizes = [8, 8], strides = [1, 1]} : vector<16x48xf32> to vector<8x8xf32>
    %31 = vector.extract_strided_slice %10 {offsets = [0, 24], sizes = [8, 8], strides = [1, 1]} : vector<16x48xf32> to vector<8x8xf32>
    %32 = vector.extract_strided_slice %10 {offsets = [0, 40], sizes = [8, 8], strides = [1, 1]} : vector<16x48xf32> to vector<8x8xf32>
    %33 = tpu.transpose %31, [1, 0] : vector<8x8xf32> -> vector<8x8xf32>
    %cst_15 = arith.constant dense<0.000000e+00> : vector<8x8xf32>
    %34 = tpu.matmul %30, %33, %cst_15 {dimension_numbers = #tpu.dot_dimension_numbers<[1], [0], [0], [1], [0, 0, 1, 1], [], []>} : vector<8x8xf32>, vector<8x8xf32>, vector<8x8xf32> -> vector<8x8xf32>
    %c1 = arith.constant 1 : index
    %c0_16 = arith.constant 0 : index
    %c0_17 = arith.constant 0 : index
    %35 = vector.load %arg2[%c1, %c0_16, %c0_17] : memref<2x8x8xf32, #tpu.memory_space<vmem>>, vector<1x8x8xf32>
    %36 = vector.shape_cast %35 : vector<1x8x8xf32> to vector<8x8xf32>
    %37 = arith.addf %34, %36 : vector<8x8xf32>
    %cst_18 = arith.constant dense<0xFF800000> : vector<8xf32>
    %38 = vector.multi_reduction <maximumf>, %37, %cst_18 [1] : vector<8x8xf32> to vector<8xf32>
    %39 = vector.shape_cast %38 : vector<8xf32> to vector<8x1xf32>
    %40 = vector.broadcast %39 : vector<8x1xf32> to vector<8x8xf32>
    %41 = arith.subf %37, %40 : vector<8x8xf32>
    %42 = math.exp %41 : vector<8x8xf32>
    %cst_19 = arith.constant dense<0.000000e+00> : vector<8xf32>
    %43 = vector.multi_reduction <add>, %42, %cst_19 [1] : vector<8x8xf32> to vector<8xf32>
    %44 = vector.shape_cast %43 : vector<8xf32> to vector<8x1xf32>
    %45 = tpu.reciprocal %44 {approx = true} : vector<8x1xf32> -> vector<8x1xf32>
    %46 = vector.broadcast %45 : vector<8x1xf32> to vector<8x8xf32>
    %47 = arith.mulf %42, %46 : vector<8x8xf32>
    %cst_20 = arith.constant dense<0.000000e+00> : vector<8x8xf32>
    %48 = tpu.matmul %47, %32, %cst_20 {dimension_numbers = #tpu.dot_dimension_numbers<[1], [0], [0], [1], [0, 0, 1, 1], [], []>} : vector<8x8xf32>, vector<8x8xf32>, vector<8x8xf32> -> vector<8x8xf32>
    %49 = tpu.concatenate %29, %48 in 1 : vector<8x8xf32>, vector<8x8xf32> -> vector<8x16xf32>
    %50 = vector.extract_strided_slice %10 {offsets = [8, 0], sizes = [8, 8], strides = [1, 1]} : vector<16x48xf32> to vector<8x8xf32>
    %51 = vector.extract_strided_slice %10 {offsets = [8, 16], sizes = [8, 8], strides = [1, 1]} : vector<16x48xf32> to vector<8x8xf32>
    %52 = vector.extract_strided_slice %10 {offsets = [8, 32], sizes = [8, 8], strides = [1, 1]} : vector<16x48xf32> to vector<8x8xf32>
    %53 = tpu.transpose %51, [1, 0] : vector<8x8xf32> -> vector<8x8xf32>
    %cst_21 = arith.constant dense<0.000000e+00> : vector<8x8xf32>
    %54 = tpu.matmul %50, %53, %cst_21 {dimension_numbers = #tpu.dot_dimension_numbers<[1], [0], [0], [1], [0, 0, 1, 1], [], []>} : vector<8x8xf32>, vector<8x8xf32>, vector<8x8xf32> -> vector<8x8xf32>
    %c0_22 = arith.constant 0 : index
    %c0_23 = arith.constant 0 : index
    %c0_24 = arith.constant 0 : index
    %55 = vector.load %arg2[%c0_22, %c0_23, %c0_24] : memref<2x8x8xf32, #tpu.memory_space<vmem>>, vector<1x8x8xf32>
    %56 = vector.shape_cast %55 : vector<1x8x8xf32> to vector<8x8xf32>
    %57 = arith.addf %54, %56 : vector<8x8xf32>
    %cst_25 = arith.constant dense<0xFF800000> : vector<8xf32>
    %58 = vector.multi_reduction <maximumf>, %57, %cst_25 [1] : vector<8x8xf32> to vector<8xf32>
    %59 = vector.shape_cast %58 : vector<8xf32> to vector<8x1xf32>
    %60 = vector.broadcast %59 : vector<8x1xf32> to vector<8x8xf32>
    %61 = arith.subf %57, %60 : vector<8x8xf32>
    %62 = math.exp %61 : vector<8x8xf32>
    %cst_26 = arith.constant dense<0.000000e+00> : vector<8xf32>
    %63 = vector.multi_reduction <add>, %62, %cst_26 [1] : vector<8x8xf32> to vector<8xf32>
    %64 = vector.shape_cast %63 : vector<8xf32> to vector<8x1xf32>
    %65 = tpu.reciprocal %64 {approx = true} : vector<8x1xf32> -> vector<8x1xf32>
    %66 = vector.broadcast %65 : vector<8x1xf32> to vector<8x8xf32>
    %67 = arith.mulf %62, %66 : vector<8x8xf32>
    %cst_27 = arith.constant dense<0.000000e+00> : vector<8x8xf32>
    %68 = tpu.matmul %67, %52, %cst_27 {dimension_numbers = #tpu.dot_dimension_numbers<[1], [0], [0], [1], [0, 0, 1, 1], [], []>} : vector<8x8xf32>, vector<8x8xf32>, vector<8x8xf32> -> vector<8x8xf32>
    %69 = vector.extract_strided_slice %10 {offsets = [8, 8], sizes = [8, 8], strides = [1, 1]} : vector<16x48xf32> to vector<8x8xf32>
    %70 = vector.extract_strided_slice %10 {offsets = [8, 24], sizes = [8, 8], strides = [1, 1]} : vector<16x48xf32> to vector<8x8xf32>
    %71 = vector.extract_strided_slice %10 {offsets = [8, 40], sizes = [8, 8], strides = [1, 1]} : vector<16x48xf32> to vector<8x8xf32>
    %72 = tpu.transpose %70, [1, 0] : vector<8x8xf32> -> vector<8x8xf32>
    %cst_28 = arith.constant dense<0.000000e+00> : vector<8x8xf32>
    %73 = tpu.matmul %69, %72, %cst_28 {dimension_numbers = #tpu.dot_dimension_numbers<[1], [0], [0], [1], [0, 0, 1, 1], [], []>} : vector<8x8xf32>, vector<8x8xf32>, vector<8x8xf32> -> vector<8x8xf32>
    %c1_29 = arith.constant 1 : index
    %c0_30 = arith.constant 0 : index
    %c0_31 = arith.constant 0 : index
    %74 = vector.load %arg2[%c1_29, %c0_30, %c0_31] : memref<2x8x8xf32, #tpu.memory_space<vmem>>, vector<1x8x8xf32>
    %75 = vector.shape_cast %74 : vector<1x8x8xf32> to vector<8x8xf32>
    %76 = arith.addf %73, %75 : vector<8x8xf32>
    %cst_32 = arith.constant dense<0xFF800000> : vector<8xf32>
    %77 = vector.multi_reduction <maximumf>, %76, %cst_32 [1] : vector<8x8xf32> to vector<8xf32>
    %78 = vector.shape_cast %77 : vector<8xf32> to vector<8x1xf32>
    %79 = vector.broadcast %78 : vector<8x1xf32> to vector<8x8xf32>
    %80 = arith.subf %76, %79 : vector<8x8xf32>
    %81 = math.exp %80 : vector<8x8xf32>
    %cst_33 = arith.constant dense<0.000000e+00> : vector<8xf32>
    %82 = vector.multi_reduction <add>, %81, %cst_33 [1] : vector<8x8xf32> to vector<8xf32>
    %83 = vector.shape_cast %82 : vector<8xf32> to vector<8x1xf32>
    %84 = tpu.reciprocal %83 {approx = true} : vector<8x1xf32> -> vector<8x1xf32>
    %85 = vector.broadcast %84 : vector<8x1xf32> to vector<8x8xf32>
    %86 = arith.mulf %81, %85 : vector<8x8xf32>
    %cst_34 = arith.constant dense<0.000000e+00> : vector<8x8xf32>
    %87 = tpu.matmul %86, %71, %cst_34 {dimension_numbers = #tpu.dot_dimension_numbers<[1], [0], [0], [1], [0, 0, 1, 1], [], []>} : vector<8x8xf32>, vector<8x8xf32>, vector<8x8xf32> -> vector<8x8xf32>
    %88 = tpu.concatenate %68, %87 in 1 : vector<8x8xf32>, vector<8x8xf32> -> vector<8x16xf32>
    %89 = tpu.concatenate %49, %88 in 0 : vector<8x16xf32>, vector<8x16xf32> -> vector<16x16xf32>
    %c0_35 = arith.constant 0 : index
    %c0_36 = arith.constant 0 : index
    %c0_37 = arith.constant 0 : index
    %90 = vector.load %arg7[%c0_35, %c0_36, %c0_37] : memref<1x16x16xf32, #tpu.memory_space<vmem>>, vector<1x16x16xf32>
    %91 = vector.shape_cast %90 : vector<1x16x16xf32> to vector<16x16xf32>
    %cst_38 = arith.constant dense<0.000000e+00> : vector<16x16xf32>
    %92 = tpu.matmul %89, %91, %cst_38 {dimension_numbers = #tpu.dot_dimension_numbers<[1], [0], [0], [1], [0, 0, 1, 1], [], []>} : vector<16x16xf32>, vector<16x16xf32>, vector<16x16xf32> -> vector<16x16xf32>
    %c0_39 = arith.constant 0 : index
    %c0_40 = arith.constant 0 : index
    %c0_41 = arith.constant 0 : index
    %93 = vector.load %arg8[%c0_39, %c0_40, %c0_41] : memref<1x1x16xf32, #tpu.memory_space<vmem>>, vector<1x1x16xf32>
    %94 = vector.shape_cast %93 : vector<1x1x16xf32> to vector<1x16xf32>
    %95 = vector.broadcast %94 : vector<1x16xf32> to vector<16x16xf32>
    %96 = arith.addf %92, %95 : vector<16x16xf32>
    %97 = arith.addf %3, %96 : vector<16x16xf32>
    %c0_42 = arith.constant 0 : index
    %c0_43 = arith.constant 0 : index
    %c0_44 = arith.constant 0 : index
    %98 = vector.load %arg9[%c0_42, %c0_43, %c0_44] : memref<1x1x16xf32, #tpu.memory_space<vmem>>, vector<1x1x16xf32>
    %99 = vector.shape_cast %98 : vector<1x1x16xf32> to vector<1x16xf32>
    %c0_45 = arith.constant 0 : index
    %c0_46 = arith.constant 0 : index
    %c0_47 = arith.constant 0 : index
    %100 = vector.load %arg10[%c0_45, %c0_46, %c0_47] : memref<1x1x16xf32, #tpu.memory_space<vmem>>, vector<1x1x16xf32>
    %101 = vector.shape_cast %100 : vector<1x1x16xf32> to vector<1x16xf32>
    %cst_48 = arith.constant dense<0.000000e+00> : vector<16xf32>
    %102 = vector.multi_reduction <add>, %97, %cst_48 [1] : vector<16x16xf32> to vector<16xf32>
    %103 = vector.shape_cast %102 : vector<16xf32> to vector<16x1xf32>
    %cst_49 = arith.constant 1.600000e+01 : f32
    %104 = vector.broadcast %cst_49 : f32 to vector<16x1xf32>
    %105 = arith.divf %103, %104 : vector<16x1xf32>
    %106 = vector.broadcast %105 : vector<16x1xf32> to vector<16x16xf32>
    %107 = arith.subf %97, %106 : vector<16x16xf32>
    %108 = arith.mulf %107, %107 : vector<16x16xf32>
    %cst_50 = arith.constant dense<0.000000e+00> : vector<16xf32>
    %109 = vector.multi_reduction <add>, %108, %cst_50 [1] : vector<16x16xf32> to vector<16xf32>
    %110 = vector.shape_cast %109 : vector<16xf32> to vector<16x1xf32>
    %cst_51 = arith.constant 1.600000e+01 : f32
    %111 = vector.broadcast %cst_51 : f32 to vector<16x1xf32>
    %112 = arith.divf %110, %111 : vector<16x1xf32>
    %113 = vector.broadcast %105 : vector<16x1xf32> to vector<16x16xf32>
    %114 = arith.subf %97, %113 : vector<16x16xf32>
    %cst_52 = arith.constant 9.99999974E-6 : f32
    %115 = vector.broadcast %cst_52 : f32 to vector<16x1xf32>
    %116 = arith.addf %112, %115 : vector<16x1xf32>
    %117 = math.rsqrt %116 : vector<16x1xf32>
    %118 = vector.broadcast %117 : vector<16x1xf32> to vector<16x16xf32>
    %119 = arith.mulf %114, %118 : vector<16x16xf32>
    %120 = vector.broadcast %99 : vector<1x16xf32> to vector<16x16xf32>
    %121 = arith.mulf %119, %120 : vector<16x16xf32>
    %122 = vector.broadcast %101 : vector<1x16xf32> to vector<16x16xf32>
    %123 = arith.addf %121, %122 : vector<16x16xf32>
    %c0_53 = arith.constant 0 : index
    %c0_54 = arith.constant 0 : index
    %c0_55 = arith.constant 0 : index
    %124 = vector.load %arg11[%c0_53, %c0_54, %c0_55] : memref<1x16x32xf32, #tpu.memory_space<vmem>>, vector<1x16x32xf32>
    %125 = vector.shape_cast %124 : vector<1x16x32xf32> to vector<16x32xf32>
    %cst_56 = arith.constant dense<0.000000e+00> : vector<16x32xf32>
    %126 = tpu.matmul %123, %125, %cst_56 {dimension_numbers = #tpu.dot_dimension_numbers<[1], [0], [0], [1], [0, 0, 1, 1], [], []>} : vector<16x16xf32>, vector<16x32xf32>, vector<16x32xf32> -> vector<16x32xf32>
    %c0_57 = arith.constant 0 : index
    %c0_58 = arith.constant 0 : index
    %c0_59 = arith.constant 0 : index
    %127 = vector.load %arg12[%c0_57, %c0_58, %c0_59] : memref<1x1x32xf32, #tpu.memory_space<vmem>>, vector<1x1x32xf32>
    %128 = vector.shape_cast %127 : vector<1x1x32xf32> to vector<1x32xf32>
    %129 = vector.broadcast %128 : vector<1x32xf32> to vector<16x32xf32>
    %130 = arith.addf %126, %129 : vector<16x32xf32>
    %cst_60 = arith.constant 0.000000e+00 : f32
    %131 = vector.broadcast %cst_60 : f32 to vector<16x32xf32>
    %132 = arith.maximumf %130, %131 : vector<16x32xf32>
    %c0_61 = arith.constant 0 : index
    %c0_62 = arith.constant 0 : index
    %c0_63 = arith.constant 0 : index
    %133 = vector.load %arg13[%c0_61, %c0_62, %c0_63] : memref<1x32x16xf32, #tpu.memory_space<vmem>>, vector<1x32x16xf32>
    %134 = vector.shape_cast %133 : vector<1x32x16xf32> to vector<32x16xf32>
    %cst_64 = arith.constant dense<0.000000e+00> : vector<16x16xf32>
    %135 = tpu.matmul %132, %134, %cst_64 {dimension_numbers = #tpu.dot_dimension_numbers<[1], [0], [0], [1], [0, 0, 1, 1], [], []>} : vector<16x32xf32>, vector<32x16xf32>, vector<16x16xf32> -> vector<16x16xf32>
    %c0_65 = arith.constant 0 : index
    %c0_66 = arith.constant 0 : index
    %c0_67 = arith.constant 0 : index
    %136 = vector.load %arg14[%c0_65, %c0_66, %c0_67] : memref<1x1x16xf32, #tpu.memory_space<vmem>>, vector<1x1x16xf32>
    %137 = vector.shape_cast %136 : vector<1x1x16xf32> to vector<1x16xf32>
    %138 = vector.broadcast %137 : vector<1x16xf32> to vector<16x16xf32>
    %139 = arith.addf %135, %138 : vector<16x16xf32>
    %140 = arith.addf %123, %139 : vector<16x16xf32>
    %c0_68 = arith.constant 0 : index
    %c0_69 = arith.constant 0 : index
    %c0_70 = arith.constant 0 : index
    %141 = vector.load %arg15[%c0_68, %c0_69, %c0_70] : memref<1x1x16xf32, #tpu.memory_space<vmem>>, vector<1x1x16xf32>
    %142 = vector.shape_cast %141 : vector<1x1x16xf32> to vector<1x16xf32>
    %c0_71 = arith.constant 0 : index
    %c0_72 = arith.constant 0 : index
    %c0_73 = arith.constant 0 : index
    %143 = vector.load %arg16[%c0_71, %c0_72, %c0_73] : memref<1x1x16xf32, #tpu.memory_space<vmem>>, vector<1x1x16xf32>
    %144 = vector.shape_cast %143 : vector<1x1x16xf32> to vector<1x16xf32>
    %cst_74 = arith.constant dense<0.000000e+00> : vector<16xf32>
    %145 = vector.multi_reduction <add>, %140, %cst_74 [1] : vector<16x16xf32> to vector<16xf32>
    %146 = vector.shape_cast %145 : vector<16xf32> to vector<16x1xf32>
    %cst_75 = arith.constant 1.600000e+01 : f32
    %147 = vector.broadcast %cst_75 : f32 to vector<16x1xf32>
    %148 = arith.divf %146, %147 : vector<16x1xf32>
    %149 = vector.broadcast %148 : vector<16x1xf32> to vector<16x16xf32>
    %150 = arith.subf %140, %149 : vector<16x16xf32>
    %151 = arith.mulf %150, %150 : vector<16x16xf32>
    %cst_76 = arith.constant dense<0.000000e+00> : vector<16xf32>
    %152 = vector.multi_reduction <add>, %151, %cst_76 [1] : vector<16x16xf32> to vector<16xf32>
    %153 = vector.shape_cast %152 : vector<16xf32> to vector<16x1xf32>
    %cst_77 = arith.constant 1.600000e+01 : f32
    %154 = vector.broadcast %cst_77 : f32 to vector<16x1xf32>
    %155 = arith.divf %153, %154 : vector<16x1xf32>
    %156 = vector.broadcast %148 : vector<16x1xf32> to vector<16x16xf32>
    %157 = arith.subf %140, %156 : vector<16x16xf32>
    %cst_78 = arith.constant 9.99999974E-6 : f32
    %158 = vector.broadcast %cst_78 : f32 to vector<16x1xf32>
    %159 = arith.addf %155, %158 : vector<16x1xf32>
    %160 = math.rsqrt %159 : vector<16x1xf32>
    %161 = vector.broadcast %160 : vector<16x1xf32> to vector<16x16xf32>
    %162 = arith.mulf %157, %161 : vector<16x16xf32>
    %163 = vector.broadcast %142 : vector<1x16xf32> to vector<16x16xf32>
    %164 = arith.mulf %162, %163 : vector<16x16xf32>
    %165 = vector.broadcast %144 : vector<1x16xf32> to vector<16x16xf32>
    %166 = arith.addf %164, %165 : vector<16x16xf32>
    %c0_79 = arith.constant 0 : index
    %c0_80 = arith.constant 0 : index
    %167 = vector.load %arg20[%c0_79, %c0_80] : memref<16x16xf32, #tpu.memory_space<vmem>>, vector<16x16xf32>
    tpu.vector_store %arg20[%c0_79, %c0_80], %166 {strides = array<i32>} : memref<16x16xf32, #tpu.memory_space<vmem>>, vector<16x16xf32>,
    %c1_i32 = arith.constant 1 : i32
    %168 = arith.cmpi eq, %arg0, %c1_i32 : i32
    %169 = arith.extui %168 : i1 to i32
    %c0_i32_81 = arith.constant 0 : i32
    %170 = arith.cmpi ne, %169, %c0_i32_81 : i32
    scf.if %170 {
      %c0_82 = arith.constant 0 : index
      %c0_83 = arith.constant 0 : index
      %171 = vector.load %arg17[%c0_82, %c0_83] : memref<16x8xf32, #tpu.memory_space<vmem>>, vector<16x8xf32>
      %cst_84 = arith.constant dense<0.000000e+00> : vector<16x8xf32>
      %172 = tpu.matmul %166, %171, %cst_84 {dimension_numbers = #tpu.dot_dimension_numbers<[1], [0], [0], [1], [0, 0, 1, 1], [], []>} : vector<16x16xf32>, vector<16x8xf32>, vector<16x8xf32> -> vector<16x8xf32>
      %c0_85 = arith.constant 0 : index
      %c0_86 = arith.constant 0 : index
      %173 = vector.load %arg18[%c0_85, %c0_86] : memref<1x8xf32, #tpu.memory_space<vmem>>, vector<1x8xf32>
      %174 = vector.broadcast %173 : vector<1x8xf32> to vector<16x8xf32>
      %175 = arith.addf %172, %174 : vector<16x8xf32>
      %cst_87 = arith.constant 0.000000e+00 : f32
      %176 = vector.broadcast %cst_87 : f32 to vector<16x8xf32>
      %177 = arith.cmpf oge, %175, %176 : vector<16x8xf32>
      %cst_88 = arith.constant 0.00999999977 : f32
      %178 = vector.broadcast %cst_88 : f32 to vector<16x8xf32>
      %179 = arith.mulf %178, %175 : vector<16x8xf32>
      %180 = arith.select %177, %175, %179 : vector<16x8xi1>, vector<16x8xf32>
      %c0_89 = arith.constant 0 : index
      %c0_90 = arith.constant 0 : index
      %181 = vector.load %arg19[%c0_89, %c0_90] : memref<16x8xf32, #tpu.memory_space<vmem>>, vector<16x8xf32>
      tpu.vector_store %arg19[%c0_89, %c0_90], %180 {strides = array<i32>} : memref<16x8xf32, #tpu.memory_space<vmem>>, vector<16x8xf32>,
    } else {
    }
    return
  }
  func.func @transform_0(%arg0: i32) -> (i32, i32) {
    %c0_i32 = arith.constant 0 : i32
    %c0_i32_0 = arith.constant 0 : i32
    %c0_i32_1 = arith.constant 0 : i32
    return %c0_i32, %c0_i32_0 : i32, i32
  }
  func.func @transform_1(%arg0: i32) -> (i32, i32, i32) {
    %c0_i32 = arith.constant 0 : i32
    %c0_i32_0 = arith.constant 0 : i32
    %c0_i32_1 = arith.constant 0 : i32
    %c0_i32_2 = arith.constant 0 : i32
    return %c0_i32, %c0_i32_0, %c0_i32_1 : i32, i32, i32
  }
  func.func @transform_2(%arg0: i32) -> (i32, i32) {
    %c0_i32 = arith.constant 0 : i32
    %c0_i32_0 = arith.constant 0 : i32
    %c0_i32_1 = arith.constant 0 : i32
    return %c0_i32, %c0_i32_0 : i32, i32
  }
  func.func @transform_3(%arg0: i32) -> (i32, i32) {
    %c0_i32 = arith.constant 0 : i32
    %c0_i32_0 = arith.constant 0 : i32
    %c0_i32_1 = arith.constant 0 : i32
    return %c0_i32, %c0_i32_0 : i32, i32
  }
  func.func @transform_4(%arg0: i32) -> (i32, i32, i32) {
    %c0_i32 = arith.constant 0 : i32
    %c0_i32_0 = arith.constant 0 : i32
    %c0_i32_1 = arith.constant 0 : i32
    return %arg0, %c0_i32, %c0_i32_0 : i32, i32, i32
  }
  func.func @transform_5(%arg0: i32) -> (i32, i32, i32) {
    %c0_i32 = arith.constant 0 : i32
    %c0_i32_0 = arith.constant 0 : i32
    %c0_i32_1 = arith.constant 0 : i32
    return %arg0, %c0_i32, %c0_i32_0 : i32, i32, i32
  }
  func.func @transform_6(%arg0: i32) -> (i32, i32, i32) {
    %c0_i32 = arith.constant 0 : i32
    %c0_i32_0 = arith.constant 0 : i32
    %c0_i32_1 = arith.constant 0 : i32
    return %arg0, %c0_i32, %c0_i32_0 : i32, i32, i32
  }
  func.func @transform_7(%arg0: i32) -> (i32, i32, i32) {
    %c0_i32 = arith.constant 0 : i32
    %c0_i32_0 = arith.constant 0 : i32
    %c0_i32_1 = arith.constant 0 : i32
    return %arg0, %c0_i32, %c0_i32_0 : i32, i32, i32
  }
  func.func @transform_8(%arg0: i32) -> (i32, i32, i32) {
    %c0_i32 = arith.constant 0 : i32
    %c0_i32_0 = arith.constant 0 : i32
    %c0_i32_1 = arith.constant 0 : i32
    return %arg0, %c0_i32, %c0_i32_0 : i32, i32, i32
  }
  func.func @transform_9(%arg0: i32) -> (i32, i32, i32) {
    %c0_i32 = arith.constant 0 : i32
    %c0_i32_0 = arith.constant 0 : i32
    %c0_i32_1 = arith.constant 0 : i32
    return %arg0, %c0_i32, %c0_i32_0 : i32, i32, i32
  }
  func.func @transform_10(%arg0: i32) -> (i32, i32, i32) {
    %c0_i32 = arith.constant 0 : i32
    %c0_i32_0 = arith.constant 0 : i32
    %c0_i32_1 = arith.constant 0 : i32
    return %arg0, %c0_i32, %c0_i32_0 : i32, i32, i32
  }
  func.func @transform_11(%arg0: i32) -> (i32, i32, i32) {
    %c0_i32 = arith.constant 0 : i32
    %c0_i32_0 = arith.constant 0 : i32
    %c0_i32_1 = arith.constant 0 : i32
    return %arg0, %c0_i32, %c0_i32_0 : i32, i32, i32
  }
  func.func @transform_12(%arg0: i32) -> (i32, i32, i32) {
    %c0_i32 = arith.constant 0 : i32
    %c0_i32_0 = arith.constant 0 : i32
    %c0_i32_1 = arith.constant 0 : i32
    return %arg0, %c0_i32, %c0_i32_0 : i32, i32, i32
  }
  func.func @transform_13(%arg0: i32) -> (i32, i32, i32) {
    %c0_i32 = arith.constant 0 : i32
    %c0_i32_0 = arith.constant 0 : i32
    %c0_i32_1 = arith.constant 0 : i32
    return %arg0, %c0_i32, %c0_i32_0 : i32, i32, i32
  }
  func.func @transform_14(%arg0: i32) -> (i32, i32, i32) {
    %c0_i32 = arith.constant 0 : i32
    %c0_i32_0 = arith.constant 0 : i32
    %c0_i32_1 = arith.constant 0 : i32
    return %arg0, %c0_i32, %c0_i32_0 : i32, i32, i32
  }
  func.func @transform_15(%arg0: i32) -> (i32, i32, i32) {
    %c0_i32 = arith.constant 0 : i32
    %c0_i32_0 = arith.constant 0 : i32
    %c0_i32_1 = arith.constant 0 : i32
    return %arg0, %c0_i32, %c0_i32_0 : i32, i32, i32
  }
  func.func @transform_16(%arg0: i32) -> (i32, i32) {
    %c0_i32 = arith.constant 0 : i32
    %c0_i32_0 = arith.constant 0 : i32
    %c0_i32_1 = arith.constant 0 : i32
    return %c0_i32, %c0_i32_0 : i32, i32
  }
  func.func @transform_17(%arg0: i32) -> (i32, i32) {
    %c0_i32 = arith.constant 0 : i32
    %c0_i32_0 = arith.constant 0 : i32
    %c0_i32_1 = arith.constant 0 : i32
    return %c0_i32, %c0_i32_0 : i32, i32
  }
  func.func @transform_18(%arg0: i32) -> (i32, i32) {
    %c0_i32 = arith.constant 0 : i32
    %c0_i32_0 = arith.constant 0 : i32
    %c0_i32_1 = arith.constant 0 : i32
    return %c0_i32, %c0_i32_0 : i32, i32
  }
}

</mosaic_0001>

<bundles_post_ra>
// kernel: tpu_custom_call.1
= control target key start
LH: loop header
LB: loop body
LE: loop exit
PB: predicated region body
PF: predicated region fallthrough
CT: control target
= control target key end

     0   :  { %s3234_s0 = inlined_call_operand.vmem [shape: f32[16,16], index: 0, kind: input, shape index: {}]   ;;  %s3235_s1 = inlined_call_operand.hbm [shape: f32[2,8,8], index: 1, kind: input, shape index: {}]   ;;  %s3236_s2 = inlined_call_operand.hbm [shape: f32[16,16], index: 2, kind: input, shape index: {}]   ;;  %s3237_s3 = inlined_call_operand.vmem [shape: f32[1,16], index: 3, kind: input, shape index: {}]   ;;  %s3238_s4 = inlined_call_operand.vmem [shape: f32[2,16,48], index: 4, kind: input, shape index: {}]   ;;  %s3239_s5 = inlined_call_operand.vmem [shape: f32[2,1,48], index: 5, kind: input, shape index: {}]   ;;  %s3240_s6 = inlined_call_operand.vmem [shape: f32[2,16,16], index: 6, kind: input, shape index: {}]   ;;  %s3241_s7 = inlined_call_operand.vmem [shape: f32[2,1,16], index: 7, kind: input, shape index: {}]   ;;  %s3242_s8 = inlined_call_operand.vmem [shape: f32[2,1,16], index: 8, kind: input, shape index: {}]   ;;  %s3243_s9 = inlined_call_operand.vmem [shape: f32[2,1,16], index: 9, kind: input, shape index: {}]   ;;  %s3244_s10 = inlined_call_operand.vmem [shape: f32[2,16,32], index: 10, kind: input, shape index: {}]   ;;  %s3245_s11 = inlined_call_operand.hbm [shape: f32[2,1,32], index: 11, kind: input, shape index: {}]   ;;  %s3246_s12 = inlined_call_operand.vmem [shape: f32[2,32,16], index: 12, kind: input, shape index: {}]   ;;  %s3247_s13 = inlined_call_operand.vmem [shape: f32[2,1,16], index: 13, kind: input, shape index: {}]   ;;  %s3248_s14 = inlined_call_operand.vmem [shape: f32[2,1,16], index: 14, kind: input, shape index: {}]   ;;  %s3249_s15 = inlined_call_operand.vmem [shape: f32[2,1,16], index: 15, kind: input, shape index: {}]   ;;  %s3250_s16 = inlined_call_operand.vmem [shape: f32[16,8], index: 16, kind: input, shape index: {}]   ;;  %s3251_s17 = inlined_call_operand.vmem [shape: f32[1,8], index: 17, kind: input, shape index: {}]   ;;  %s3252_s18 = inlined_call_operand.vmem [shape: f32[16,8], index: 18, kind: output, shape index: {}]  }
   0x1   :  { %3265 = sst [smem:[#allocation14_spill]] %s3234_s0 }
   0x2   :  { %3266 = sst [smem:[#allocation15_spill]] %s3235_s1 }
   0x3   :  { %3267 = sst [smem:[#allocation16_spill]] %s3236_s2 }
   0x4   :  { %3268 = sst [smem:[#allocation17_spill]] %s3237_s3 }
   0x5   :  { %3269 = sst [smem:[#allocation18_spill]] %s3238_s4 }
   0x6   :  { %3270 = sst [smem:[#allocation19_spill]] %s3240_s6 }
   0x7   :  { %3271 = sst [smem:[#allocation20_spill]] %s3245_s11 }
   0x8   :  { %3272 = sst [smem:[#allocation21_spill]] %s3246_s12 }
   0x9   :  { %3273 = sst [smem:[#allocation22_spill]] %s3248_s14 }
   0xa   :  { %3274 = sst [smem:[#allocation23_spill]] %s3249_s15 }
   0xb   :  { %3275 = sst [smem:[#allocation24_spill]] %s3250_s16 }
   0xc   :  { %3276 = sst [smem:[#allocation25_spill]] %s3251_s17 }
   0xd   :  { %3277 = sst [smem:[#allocation26_spill]] %s3252_s18 }
   0xe   :  { %23 = vsyncpa [#allocation4], 0 }
   0xf   :  { %24 = vsyncpa [#allocation6], 0  ;;  %s2835_s27 = smov 0   ;;  %s2837_s28 = smov 0  }
  0x10   :  { %s2839_s29 = smov 0   ;;  %s2841_s30 = smov 0  }
  0x11 LB: > { %3278 = sst [smem:[#allocation11_spill]] %s2717_s28  ;;  %s2854_s0 = sadd.s32 4294967295, %s2725_s30   ;;  %s2725_s30 = sphi %s2841_s30, %s3315_s30   ;;  %s2721_s29 = sphi %s2839_s29, %s3314_s29   ;;  %s2717_s28 = sphi %s2837_s28, %s3313_s28   ;;  %s2713_s27 = sphi %s2835_s27, %s3312_s27  }
  0x12   : > { %3279 = sst [smem:[#allocation12_spill]] %s2721_s29  ;;  %p316_p0 = scmp.ne.s32.totalorder %s2717_s28, %s2713_s27 }
  0x13   : > { %p3258_p1 = scmp.eq.s32.totalorder %s2854_s0, 0  ;;  %p2289_p2 = scmp.ge.s32.totalorder %s2725_s30, 1 }
  0x14   : > { %p494_p3 = scmp.lt.s32.totalorder %s2725_s30, 3  ;;  %s2727_s20 = smov [#allocation3]  }
  0x15   : > { %p2863_p5 = por %p3258_p1, %p316_p0  ;;  %s509_s21 = sshll.u32 %s2727_s20, 4  ;;  %s510_s21 = int_to_ptr.vmem [resolvable:$true] %s509_s21 }
  0x16   : > { %p2867_p6 = pnand %p2289_p2, %p494_p3  ;;  %s2728_s2 = smov [#allocation5]  }
  0x17   : > { %s3280_s19 = scalar_select %p2863_p5, 1, 0 }
  0x18   : > { %s3281_s1 = scalar_select %p2867_p6, 1, 0 }
  0x19   : > { %p2513_p7 = pneg %p2867_p6  ;;  %s522_s23 = sshll.u32 %s2728_s2, 4  ;;  %s2879_s23 = int_to_ptr.vmem [resolvable:$true] %s522_s23 }
  0x1a   : > { %s3283_s26 = sld [smem:[#allocation15_spill]] }
  0x1b   : > { %p2875_p8 = pnand %p2513_p7, %p3258_p1 }
  0x1d   : > { %p2599_p10 = pneg %p2875_p8 }
  0x20   : > { %s2597_s27 = scalar_lea.hbm %s3283_s26, 256 }
  0x21   : > { %p2598_p9 = scmp.ne.s32.totalorder %s3283_s26, %s2597_s27  ;;  %p2604_p13 = scmp.lt.u32.totalorder %s2597_s27, %s3283_s26 }
  0x23   : > { %p2600_p11 = pnand %p2599_p10, %p2598_p9 }
  0x25   : > { %p2601_p12 = pneg %p2600_p11 }
  0x27   : > { %p2606_p0 = pnand %p2604_p13, %p2601_p12 }
  0x29   : > { %2609 = shalt.err (!%p2606_p0)
}
  0x2a   : > { %s2610_s2 = scalar_lea.vmem %s510_s21, 256  ;;  %p2618_p4 = scmp.lt.s32.totalorder %s510_s21, %s510_s21 }
  0x2b   : > { %p2611_p2 = scmp.ne.s32.totalorder %s510_s21, %s2610_s2  ;;  %p2619_p1 = scmp.lt.s32.totalorder %s2610_s2, %s2610_s2 }
  0x2d   : > { %p2613_p3 = pnand %p2611_p2, %p2599_p10  ;;  %p2620_p5 = por %p2619_p1, %p2618_p4 }
  0x2f   : > { %p2614_p7 = pneg %p2613_p3 }
  0x31   : > { %p2621_p6 = pnand %p2620_p5, %p2614_p7 }
  0x33   : > { %2624 = shalt.err (!%p2621_p6)
}
  0x34   : > { %s2729_s18 = smov 128   ;;  %s2730_s24 = smov 8  }
  0x35   : > { %2516 = dma.hbm_to_vmem [thread:$0]  (!%p2875_p8), %s3283_s26, 256, %s510_s21, [#allocation4], %s2729_s18, %s2729_s18, %s2730_s24  }
  0x36   : > { %s3284_s20 = sld [smem:[#allocation16_spill]] }
  0x3c   : > { %s2625_s3 = scalar_lea.hbm %s3284_s20, 256 }
  0x3d   : > { %p2626_p9 = scmp.ne.s32.totalorder %s3284_s20, %s2625_s3  ;;  %p2632_p5 = scmp.lt.u32.totalorder %s2625_s3, %s3284_s20 }
  0x3f   : > { %p2628_p1 = pnand %p2626_p9, %p2599_p10 }
  0x41   : > { %p2629_p4 = pneg %p2628_p1 }
  0x43   : > { %p2634_p6 = pnand %p2632_p5, %p2629_p4 }
  0x45   : > { %2637 = shalt.err (!%p2634_p6)
}
  0x46   : > { %s2638_s21 = scalar_lea.vmem %s2879_s23, 256  ;;  %p2646_p0 = scmp.lt.s32.totalorder %s2879_s23, %s2879_s23 }
  0x47   : > { %p2639_p11 = scmp.ne.s32.totalorder %s2879_s23, %s2638_s21  ;;  %p2647_p2 = scmp.lt.s32.totalorder %s2638_s21, %s2638_s21 }
  0x49   : > { %p2641_p12 = pnand %p2639_p11, %p2599_p10  ;;  %p2648_p3 = por %p2647_p2, %p2646_p0 }
  0x4b   : > { %p2642_p13 = pneg %p2641_p12 }
  0x4d   : > { %p2649_p7 = pnand %p2648_p3, %p2642_p13 }
  0x4f   : > { %2652 = shalt.err (!%p2649_p7)
}
  0x50   : > { %2519 = dma.hbm_to_vmem [thread:$0]  (!%p2875_p8), %s3284_s20, 256, %s2879_s23, [#allocation6], %s2729_s18, %s2729_s18, %s2730_s24  }
  0x51   : > { %s2929_s14 = sadd.s32 1, %s2725_s30   ;;  %s303_s15 = sadd.s32 1, %s2721_s29 }
  0x52   : > { %s300_s22 = ssub.s32 %s2725_s30, %s2929_s14  ;;  %p310_p10 = scmp.ne.s32.totalorder %s2721_s29, %s2717_s28 }
  0x53   : > { %p301_p9 = scmp.eq.s32.totalorder %s300_s22, 0  ;;  %p311_p1 = scmp.eq.s32.totalorder %s2725_s30, 0 }
  0x54   : > { %p2526_p4 = scmp.lt.s32.totalorder %s2725_s30, 2  ;;  %s593_s16 = sand.u32 1, %s2725_s30  }
  0x55   : > { %s2940_s17 = scalar_select %p301_p9, %s2721_s29, %s303_s15  }
  0x56   : > { %p312_p5 = por %p311_p1, %p310_p10  ;;  %s595_s25 = sand.u32 1, %s2721_s29  }
  0x57   : > { %3285 = sst [smem:[#allocation13_spill]] %s2940_s17  ;;  %s2293_s27 = sshll.u32 %s2725_s30, 4 }
  0x58   : > { %s3286_s11 = sld [smem:[#allocation20_spill]]  ;;  %s596_s23 = scalar_lea.vmem [#allocation7], %s595_s25 }
  0x59   : > { %s603_s18 = sshll.u32 %s596_s23, 4  ;;  %p2949_p8 = pnand %p2526_p4, %p312_p5  ;;  %s2953_s18 = int_to_ptr.vmem [resolvable:$true] %s603_s18 }
  0x5a   : > { %s594_s30 = scalar_lea.sflag [#allocation4], %s593_s16 }
  0x5b   : > { %p2655_p11 = pneg %p2949_p8 }
  0x5e   : > { %s2947_s3 = scalar_lea.hbm %s3286_s11, %s2293_s27  ;;  %s2658_s25 = scalar_lea.hbm %s3286_s11, 32 }
  0x5f   : > { %s2653_s12 = scalar_lea.hbm %s2947_s3, 16  ;;  %p2659_p0 = scmp.lt.u32.totalorder %s2947_s3, %s3286_s11 }
  0x60   : > { %p2654_p6 = scmp.ne.s32.totalorder %s2947_s3, %s2653_s12  ;;  %p2660_p2 = scmp.lt.u32.totalorder %s2658_s25, %s2653_s12 }
  0x61   : > { %p2662_p7 = scmp.lt.u32.totalorder %s2653_s12, %s2947_s3 }
  0x62   : > { %p2656_p12 = pnand %p2655_p11, %p2654_p6  ;;  %p2661_p3 = por %p2660_p2, %p2659_p0 }
  0x64   : > { %p2657_p13 = pneg %p2656_p12  ;;  %p2663_p10 = por %p2662_p7, %p2661_p3 }
  0x66   : > { %p2664_p9 = pnand %p2663_p10, %p2657_p13 }
  0x68   : > { %2667 = shalt.err (!%p2664_p9)
}
  0x69   : > { %s2668_s16 = scalar_lea.vmem %s2953_s18, 16  ;;  %s2731_s21 = smov [#allocation7]  }
  0x6a   : > { %p2669_p1 = scmp.ne.s32.totalorder %s2953_s18, %s2668_s16  ;;  %s2673_s23 = sshll.u32 %s2731_s21, 4  ;;  %s2674_s23 = int_to_ptr.vmem [resolvable:$false] %s2673_s23 }
  0x6b   : > { %s2675_s15 = scalar_lea.vmem %s2674_s23, 32  ;;  %p2676_p6 = scmp.lt.s32.totalorder %s2953_s18, %s2674_s23 }
  0x6c   : > { %p2671_p4 = pnand %p2669_p1, %p2655_p11  ;;  %p2677_p12 = scmp.lt.s32.totalorder %s2675_s15, %s2668_s16 }
  0x6e   : > { %p2672_p5 = pneg %p2671_p4  ;;  %p2678_p0 = por %p2677_p12, %p2676_p6 }
  0x70   : > { %p2679_p2 = pnand %p2678_p0, %p2672_p5 }
  0x72   : > { %2682 = shalt.err (!%p2679_p2)
}
  0x73   : > { %2523 = dma.hbm_to_vmem [thread:$0]  (!%p2949_p8), %s2947_s3, 16, %s2953_s18, %s594_s30  }
  0x74   : > { %p3288_p13 = scmp.ne.s32.totalorder %s3281_s1, 0 }
  0x75   : > { %p3289_p11 = scmp.eq.s32.totalorder (!%p3288_p13), %s2854_s0, 0 }
  0x76   : > { %638 = sbr.rel (%p3288_p13) target bundleno = 3081 (0xc09), region = 92 }
  0x7d   : > { %2700 = dma.done.wait (%p3289_p11), [#allocation4], 256   ;;  %p3290_p3 = pmov %p3289_p11 }
  0x7f   : > { %2702 = vsyncadd (%p3290_p3), [#allocation4], 4294967040  ;;  %p3291_p7 = pmov %p3290_p3 }
  0x80   : > { %p3292_p10 = pmov %p3290_p3 }
  0x81   : > { %2704 = dma.done.wait (%p3291_p7), [#allocation6], 256  }
  0x82   : > { %2706 = vsyncadd (%p3292_p10), [#allocation6], 4294967040  ;;  %s648_s24 = sand.u32 1, %s2854_s0   ;;  %s650_s3 = sand.u32 1, %s2717_s28  }
  0x83   : > { %s649_s18 = scalar_lea.sflag [#allocation4], %s648_s24  ;;  %s2992_s1 = scalar_lea.vmem [#allocation7], %s650_s3 }
  0x84   : > { %p3293_p8 = scmp.ne.s32.totalorder %s3280_s19, 0 }
  0x86   : > { %2708 = dma.done.wait (%p3293_p8), %s649_s18, 16  }
  0x87   : > { %2710 = vsyncadd (%p3293_p8), %s649_s18, 4294967280  ;;  %p739_p9 = scmp.lt.s32.totalorder %s2854_s0, 1  ;;  %s3294_s4 = sld [smem:[#allocation18_spill]] }
  0x88   : > { %s3295_s6 = sld [smem:[#allocation19_spill]]  ;;  %s3296_s18 = sld [smem:[#allocation21_spill]] }
  0x89   : > { %s3000_s30 = scalar_select %p739_p9, %s2854_s0, 1 }
  0x8a   : > { %s3297_s26 = sld [smem:[#allocation22_spill]]  ;;  %s3298_s28 = sld [smem:[#allocation23_spill]] }
  0x8b   : > { %s2343_s12 = sshll.u32 %s3000_s30, 4  ;;  %s2346_s21 = sshll.u32 %s3000_s30, 5 }
  0x8c   : > { %s773_s17 = scalar_lea.vmem %s3247_s13, %s3000_s30  ;;  %p3299_p1 = scmp.ne.s32.totalorder %s2854_s0, 0 }
  0x8d   : > { %s3010_s16 = scalar_lea.vmem %s3294_s4, %s2343_s12  ;;  %s3032_s4 = scalar_lea.vmem %s3244_s10, %s2343_s12  ;;  %v786_v0 = vld [vmem:[#allocation5] sm:$0xff] (!%p3299_p1)  ;;  %v787_v1 = vld [vmem:[#allocation5 + $0x8] sm:$0xff] (!%p3299_p1)  ;;  %vm795_vm0 = vcmask (!%p3299_p1), 130048  }
  0x8e   : > { %s3015_s15 = scalar_lea.vmem %s3295_s6, %s2343_s12  ;;  %s3042_s29 = scalar_lea.vmem %s3296_s18, %s2346_s21  ;;  %v2475_v3 = vpack.c.bf16 (!%p3299_p1), %v787_v1, %v786_v0 }
  0x8f   : > { %783 = sbr.rel (%p3299_p1) target bundleno = 370 (0x172), region = 108  ;;  %s3300_s2 = sld [smem:[#allocation14_spill]] (!%p3299_p1) }
  0x90   : > { %s776_s22 = scalar_lea.vmem %s3297_s26, %s3000_s30  ;;  %s779_s27 = scalar_lea.vmem %s3298_s28, %s3000_s30  ;;  %2476 = vmatprep.subr.bf16.mxu0 (!%p3299_p1), %v2475_v3 }
  0x91   : > { %2478 = vmatpush3.bf16.msra.mxu0 (!%p3299_p1), %v2475_v3  ;;  %s3301_s21 = sld [smem:[#allocation17_spill]] (!%p3299_p1) }
  0x95   : > { %v784_v2 = vld [vmem:[%s3300_s2] sm:$0xff] (!%p3299_p1)  ;;  %v785_v4 = vld [vmem:[%s3300_s2 + $0x8] sm:$0xff] (!%p3299_p1) }
  0x96   : > { %2393 = vmatprep.mubr.msk.f32.mxu0 %vm795_vm0, %v784_v2 }
  0x97   : > { %2394 = vmatmul.mubr.msk.f32.vlgmr.msra.gmra.mrb[0].mxu0 %vm795_vm0, %v785_v4  ;;  %v2306_v5 = vld [vmem:[%s3301_s21] ss:$0 sm:$0xff] }
 0x16a   : > { %v2395_v6 = vpop.f32.mrb[0].mxu0 }
 0x16b   : > { %v874_v7 = vadd.f32 %v2395_v6, %v2306_v5  ;;  %v868_v8 = vpop.f32.mrb[1].mxu0 }
 0x16c   : > { %v869_v9 = vadd.f32 %v2306_v5, %v868_v8 }
 0x16d   : > { %vm878_vm1 = vcmp.ge.f32.partialorder %v874_v7, 0.0  ;;  %v880_v10 = vmul.f32 0.01, %v874_v7 }
 0x16e   : > { %vm877_vm2 = vcmp.ge.f32.partialorder %v869_v9, 0.0  ;;  %v879_v11 = vmul.f32 0.01, %v869_v9 }
 0x16f   : > { %v882_v12 = vsel %vm878_vm1, %v874_v7, %v880_v10 }
 0x170   : > { %884 = vst.msk [vmem:[#allocation2 + $0x8] sm:$0xff] %vm795_vm0, %v882_v12  ;;  %v881_v13 = vsel %vm877_vm2, %v869_v9, %v879_v11 }
 0x171   : > { %883 = vst.msk [vmem:[#allocation2] sm:$0xff] %vm795_vm0, %v881_v13 }
 0x172 PF: > { %v887_v14 = vld [vmem:[%s3010_s16] sm:$0xff]  ;;  %v888_v15 = vld [vmem:[%s3010_s16 + $0x8] sm:$0xff]  ;;  %vm896_vm3 = vcmask 130048   ;;  %v2732_v19 = vmov 0.0   ;;  %vm2733_vm4 = vmmov 0   ;;  %s3302_s24 = scalar_lea.vmem %s3239_s5, %s3000_s30  ;;  %s2734_s3 = smov 120  }
 0x173   : > { %v2479_v17 = vpack.c.bf16 %v888_v15, %v887_v14  ;;  %2403 = vmatprep.subr.mxu1 %v2732_v19  ;;  %2405 = vmatprep.mubr.msk.f32.mxu1 %vm2733_vm4, %v2732_v19  ;;  %v2309_v20 = vld [vmem:[%s3302_s24] ss:$0 sm:$0xff]  ;;  %s2735_s11 = smov 112   ;;  %s2736_s20 = smov 104   ;;  %vm982_vm5 = vcmask 64512   ;;  %v978_v31 = vld [vmem:[#allocation3] sm:$0xff] }
 0x174   : > { %v1145_v35 = vld [vmem:[#allocation3 + $0x8] sm:$0xff]  ;;  %s2737_s25 = smov 96   ;;  %s2738_s6 = smov 88   ;;  %vm1890_vm6 = vcmask 261120  }
 0x175   : > { %2480 = vmatprep.subr.bf16.mxu0 %v2479_v17  ;;  %s2739_s12 = smov 8   ;;  %s3303_s18 = scalar_lea.vmem %s3241_s7, %s3000_s30 }
 0x176   : > { %2482 = vmatpush3.bf16.msra.mxu0 %v2479_v17  ;;  %s3304_s19 = scalar_lea.vmem %s3242_s8, %s3000_s30  ;;  %s3305_s23 = scalar_lea.vmem %s3243_s9, %s3000_s30 }
 0x177   : > { %v3073_v18 = vld [vmem:[#allocation2 + $0x8] sm:$0xff]  ;;  %2408 = vmatprep.subr.mxu0 %v2732_v19  ;;  %p2337_p4 = scmp.ne.s32.totalorder %s2854_s0, 1 }
 0x178   : > { %v3069_v16 = vld [vmem:[#allocation2] sm:$0xff]  ;;  %s3310_s28 = sld [smem:[#allocation26_spill]] (!%p2337_p4) }
 0x179   : > { %2400 = vmatprep.mubr.msk.f32.mxu0 %vm896_vm3, %v3069_v16 }
 0x17a   : > { %2401 = vmatmul.mubr.msk.f32.vlgmr.msra.gmra.mrb[0].mxu0 %vm896_vm3, %v3073_v18 }
 0x17b   : > { %2410 = vmatprep.mubr.msk.f32.mxu0 %vm2733_vm4, %v2732_v19 }
 0x24d   : > { %v2402_v21 = vpop.f32.mrb[0].mxu0 }
 0x24e   : > { %v969_v22 = vpop.f32.mrb[1].mxu0  ;;  %v3092_v24 = vadd.f32 %v2402_v21, %v2309_v20 }
 0x24f   : > { %v3088_v23 = vadd.f32 %v2309_v20, %v969_v22 }
 0x251   : > { %1146 = vrot.lane.b32.xlu1 %v3088_v23, %s2734_s3  ;;  %980 = vrot.lane.b32.xlu0 %v3088_v23, %s2735_s11 }
 0x255   : > { %1317 = vrot.lane.b32.xlu1 %v3092_v24, %s2735_s11  ;;  %1148 = vrot.lane.b32.xlu0 %v3088_v23, %s2736_s20 }
 0x259   : > { %1480 = vrot.lane.b32.xlu1 %v3092_v24, %s2734_s3  ;;  %1482 = vrot.lane.b32.xlu0 %v3092_v24, %s2736_s20 }
 0x2c3   : > { %v981_v25 = vpop.permute.xlu0 %980  ;;  %v1147_v26 = vpop.permute.xlu1 %1146 }
 0x2c4   : > { %2404 = vmatpush3.xpose.msk.msra.mxu1 %vm982_vm5, %v981_v25  ;;  %v1651_v25 = vld [vmem:[%s3015_s15 + $0x8] sm:$0xff] }
 0x2c5   : > { %2413 = vmatprep.subr.mxu1 %v2732_v19 }
 0x2c7   : > { %2406 = vmatmul.mubr.msk.f32.vlgmr.msra.gmra.mrb[0].mxu1 %vm982_vm5, %v3088_v23  ;;  %v1149_v27 = vpop.permute.xlu0 %1148  ;;  %v1318_v28 = vpop.permute.xlu1 %1317 }
 0x2c8   : > { %2414 = vmatpush3.xpose.msk.msra.mxu1 %vm982_vm5, %v1149_v27  ;;  %2415 = vmatprep.mubr.msk.f32.mxu1 %vm2733_vm4, %v2732_v19 }
 0x2c9   : > { %2423 = vmatprep.subr.mxu1 %v2732_v19 }
 0x2cb   : > { %2416 = vmatmul.mubr.msk.f32.vlgmr.msra.gmra.mrb[2].mxu1 %vm982_vm5, %v1147_v26  ;;  %v1483_v29 = vpop.permute.xlu0 %1482  ;;  %v1481_v30 = vpop.permute.xlu1 %1480 }
 0x2cc   : > { %2424 = vmatpush3.xpose.msk.msra.mxu1 %vm982_vm5, %v1318_v28  ;;  %2425 = vmatprep.mubr.msk.f32.mxu1 %vm2733_vm4, %v2732_v19 }
 0x2cd   : > { %2433 = vmatprep.subr.mxu1 %v2732_v19 }
 0x2cf   : > { %2426 = vmatmul.mubr.msk.f32.vlgmr.msra.gmra.mrb[4].mxu1 %vm982_vm5, %v3092_v24 }
 0x2d0   : > { %2434 = vmatpush3.xpose.msk.msra.mxu1 %vm982_vm5, %v1483_v29  ;;  %2435 = vmatprep.mubr.msk.f32.mxu1 %vm2733_vm4, %v2732_v19 }
 0x2d3   : > { %2436 = vmatmul.mubr.msk.f32.vlgmr.msra.gmra.mrb[6].mxu1 %vm982_vm5, %v1481_v30 }
 0x39a   : > { %v1053_v32 = vpop.f32.mrb[0].mxu1 }
 0x39b   : > { %v1054_v33 = vadd.f32 %v1053_v32, %v978_v31  ;;  %v2407_v34 = vpop.f32.mrb[1].mxu1 }
 0x39d   : > { %v1057_v36 = vsel %vm982_vm5, %v1054_v33, -inf }
 0x39e   : > { %1058 = vmax.xlane.f32.xlu0 %v1057_v36  ;;  %v1220_v37 = vpop.f32.mrb[2].mxu1 }
 0x39f   : > { %v1221_v38 = vadd.f32 %v1220_v37, %v1145_v35  ;;  %v2417_v39 = vpop.f32.mrb[3].mxu1 }
 0x3a1   : > { %v1224_v40 = vsel %vm982_vm5, %v1221_v38, -inf }
 0x3a2   : > { %1225 = vmax.xlane.f32.xlu1 %v1224_v40  ;;  %v1389_v41 = vpop.f32.mrb[4].mxu1 }
 0x3a3   : > { %v1390_v42 = vadd.f32 %v1389_v41, %v978_v31  ;;  %v2427_v43 = vpop.f32.mrb[5].mxu1 }
 0x3a5   : > { %v1393_v44 = vsel %vm982_vm5, %v1390_v42, -inf }
 0x3a6   : > { %1394 = vmax.xlane.f32.xlu0 %v1393_v44  ;;  %v1554_v45 = vpop.f32.mrb[6].mxu1 }
 0x3a7   : > { %v1555_v46 = vadd.f32 %v1554_v45, %v1145_v35  ;;  %v2437_v47 = vpop.f32.mrb[7].mxu1 }
 0x3a9   : > { %v1558_v48 = vsel %vm982_vm5, %v1555_v46, -inf }
 0x3aa   : > { %1559 = vmax.xlane.f32.xlu0 %v1558_v48 }
 0x3b3   : > { %1068 = vrot.lane.b32.xlu1 %v3088_v23, %s2737_s25 }
 0x42b   : > { %v1059_v49 = vpop.xlane.xlu0 %1058 }
 0x42c   : > { %v1060_v50 = vsub.f32 %v1054_v33, %v1059_v49 }
 0x42e   : > { %v1061_v51 = vmul.f32 1.442695, %v1060_v50 }
 0x42f   : > { %v1226_v52 = vpop.xlane.xlu1 %1225 }
 0x430   : > { %2573 = vpow2.f32 %v1061_v51  ;;  %v1227_v53 = vsub.f32 %v1221_v38, %v1226_v52  ;;  %v2324_v38 = vld [vmem:[%s3303_s18] ss:$0 sm:$0xff]  ;;  %s3309_s18 = sld [smem:[#allocation25_spill]] (!%p2337_p4) }
 0x432   : > { %v1228_v54 = vmul.f32 1.442695, %v1227_v53 }
 0x433   : > { %v1069_v55 = vpop.permute.xlu1 %1068  ;;  %v1395_v56 = vpop.xlane.xlu0 %1394 }
 0x434   : > { %2575 = vpow2.f32 %v1228_v54  ;;  %v1396_v57 = vsub.f32 %v1390_v42, %v1395_v56  ;;  %2409 = vmatpush3.msra.mxu0 %v1069_v55  ;;  %v1787_v55 = vld [vmem:[%s3032_s4] sm:$0xff]  ;;  %v1788_v56 = vld [vmem:[%s3032_s4 + $0x8] sm:$0xff] }
 0x435   : > { %2418 = vmatprep.subr.mxu0 %v2732_v19 }
 0x436   : > { %v1397_v58 = vmul.f32 1.442695, %v1396_v57  ;;  %v2487_v57 = vpack.c.bf16 %v1788_v56, %v1787_v55 }
 0x437   : > { %v1560_v59 = vpop.xlane.xlu0 %1559 }
 0x438   : > { %2577 = vpow2.f32 %v1397_v58  ;;  %v1561_v60 = vsub.f32 %v1555_v46, %v1560_v59  ;;  %v1879_v58 = vld [vmem:[%s3042_s29] sm:$0xff]  ;;  %v1880_v59 = vld [vmem:[%s3042_s29 + $0x8] sm:$0xff] }
 0x43a   : > { %v2574_v61 = vpop.eup %2573  ;;  %v1562_v62 = vmul.f32 1.442695, %v1561_v60  ;;  %v2491_v60 = vpack.c.bf16 %v1880_v59, %v1879_v58 }
 0x43b   : > { %v1063_v63 = vsel %vm982_vm5, %v2574_v61, 0.0 }
 0x43c   : > { %2579 = vpow2.f32 %v1562_v62  ;;  %1064 = vadd.xlane.f32.xlu1 %v1063_v63 }
 0x43e   : > { %v2576_v0 = vpop.eup %2575 }
 0x43f   : > { %v1230_v1 = vsel %vm982_vm5, %v2576_v0, 0.0 }
 0x440   : > { %1231 = vadd.xlane.f32.xlu0 %v1230_v1 }
 0x442   : > { %v2578_v2 = vpop.eup %2577 }
 0x443   : > { %v1399_v3 = vsel %vm982_vm5, %v2578_v2, 0.0 }
 0x444   : > { %1400 = vadd.xlane.f32.xlu1 %v1399_v3 }
 0x446   : > { %v2580_v4 = vpop.eup %2579 }
 0x447   : > { %v1564_v5 = vsel %vm982_vm5, %v2580_v4, 0.0 }
 0x448   : > { %1565 = vadd.xlane.f32.xlu0 %v1564_v5 }
 0x455   : > { %1404 = vrot.lane.b32.xlu1 %v3092_v24, %s2737_s25 }
 0x459   : > { %1569 = vrot.lane.b32.xlu1 %v3092_v24, %s2738_s6  ;;  %v1650_v24 = vld [vmem:[%s3015_s15] sm:$0xff] }
 0x45a   : > { %v2483_v26 = vpack.c.bf16 %v1651_v25, %v1650_v24 }
 0x45c   : > { %2484 = vmatprep.subr.bf16.mxu1 %v2483_v26 }
 0x45d   : > { %2486 = vmatpush3.bf16.msra.mxu1 %v2483_v26  ;;  %v2332_v26 = vld [vmem:[%s773_s17] ss:$0 sm:$0xff] }
 0x45e   : > { %1235 = vrot.lane.b32.xlu0 %v3088_v23, %s2738_s6  ;;  %2492 = vmatprep.subr.bf16.mxu1 %v2491_v60 }
 0x4c9   : > { %v1065_v6 = vpop.xlane.xlu1 %1064 }
 0x4ca   : > { %2581 = vrcp.f32 %v1065_v6  ;;  %v2328_v6 = vld [vmem:[%s3305_s23] ss:$0 sm:$0xff] }
 0x4cd   : > { %v1232_v7 = vpop.xlane.xlu0 %1231 }
 0x4ce   : > { %2583 = vrcp.f32 %v1232_v7 }
 0x4d1   : > { %v1401_v8 = vpop.xlane.xlu1 %1400 }
 0x4d2   : > { %2585 = vrcp.f32 %v1401_v8 }
 0x4d4   : > { %v2582_v9 = vpop.eup %2581 }
 0x4d5   : > { %v1067_v10 = vmul.f32 %v2582_v9, %v2574_v61  ;;  %v1566_v11 = vpop.xlane.xlu0 %1565  ;;  %v1405_v14 = vpop.permute.xlu1 %1404 }
 0x4d6   : > { %2587 = vrcp.f32 %v1566_v11 }
 0x4d7   : > { %2411 = vmatmul.mubr.msk.f32.vlgmr.msra.gmra.mrb[2].mxu0 %vm982_vm5, %v1067_v10 }
 0x4d8   : > { %v2584_v12 = vpop.eup %2583  ;;  %2420 = vmatprep.mubr.msk.f32.mxu0 %vm2733_vm4, %v2732_v19 }
 0x4d9   : > { %v1234_v13 = vmul.f32 %v2584_v12, %v2576_v0  ;;  %v1236_v15 = vpop.permute.xlu0 %1235  ;;  %v1570_v21 = vpop.permute.xlu1 %1569 }
 0x4da   : > { %2419 = vmatpush3.msra.mxu0 %v1236_v15 }
 0x4db   : > { %2421 = vmatmul.mubr.msk.f32.vlgmr.msra.gmra.mrb[4].mxu0 %vm982_vm5, %v1234_v13  ;;  %2428 = vmatprep.subr.mxu0 %v2732_v19  ;;  %v1881_v13 = vld [vmem:[%s3042_s29 + $0x10] sm:$0xff] }
 0x4dc   : > { %v2586_v17 = vpop.eup %2585  ;;  %2429 = vmatpush3.msra.mxu0 %v1405_v14  ;;  %2430 = vmatprep.mubr.msk.f32.mxu0 %vm2733_vm4, %v2732_v19  ;;  %v1882_v14 = vld [vmem:[%s3042_s29 + $0x18] sm:$0xff] }
 0x4dd   : > { %v1403_v20 = vmul.f32 %v2586_v17, %v2578_v2  ;;  %2438 = vmatprep.subr.mxu0 %v2732_v19  ;;  %v2495_v15 = vpack.c.bf16 %v1882_v14, %v1881_v13  ;;  %v2329_v17 = vld [vmem:[%s2992_s1] ss:$0 sm:$0xff] }
 0x4df   : > { %2431 = vmatmul.mubr.msk.f32.vlgmr.msra.gmra.mrb[6].mxu0 %vm982_vm5, %v1403_v20 }
 0x4e0   : > { %v2588_v22 = vpop.eup %2587  ;;  %2439 = vmatpush3.msra.mxu0 %v1570_v21  ;;  %2440 = vmatprep.mubr.msk.f32.mxu0 %vm2733_vm4, %v2732_v19 }
 0x4e1   : > { %v1568_v23 = vmul.f32 %v2588_v22, %v2580_v4  ;;  %2488 = vmatprep.subr.bf16.mxu0 %v2487_v57  ;;  %v2327_v4 = vld [vmem:[%s3304_s19] ss:$0 sm:$0xff]  ;;  %s3311_s19 = smov (!%p2337_p4), %s3310_s28 }
 0x4e3   : > { %2441 = vmatmul.mubr.msk.f32.vlgmr.msra.gmra.mrb[8].mxu0 %vm982_vm5, %v1568_v23 }
 0x4e4   : > { %2490 = vmatpush3.bf16.msra.mxu0 %v2487_v57 }
 0x5aa   : > { %v1140_v27 = vpop.f32.mrb[2].mxu0 }
 0x5ab   : > { %v2412_v28 = vpop.f32.mrb[3].mxu0 }
 0x5ae   : > { %v1307_v29 = vpop.f32.mrb[4].mxu0 }
 0x5af   : > { %1312 = vrot.lane.b32.xlu0 %v1307_v29, %s2739_s12  ;;  %v2422_v30 = vpop.f32.mrb[5].mxu0 }
 0x5b2   : > { %v1476_v31 = vpop.f32.mrb[6].mxu0 }
 0x5b3   : > { %v2432_v32 = vpop.f32.mrb[7].mxu0 }
 0x5b6   : > { %v1641_v33 = vpop.f32.mrb[8].mxu0 }
 0x5b7   : > { %1646 = vrot.lane.b32.xlu1 %v1641_v33, %s2739_s12  ;;  %v2442_v19 = vpop.f32.mrb[9].mxu0  ;;  %s3308_s12 = sld [smem:[#allocation24_spill]] (!%p2337_p4) }
 0x5bd   : > { %v2024_v58 = vld [vmem:[%s3308_s12] sm:$0xff] (!%p2337_p4)  ;;  %v2025_v59 = vld [vmem:[%s3308_s12 + $0x8] sm:$0xff] (!%p2337_p4) }
 0x621   : > { %v1313_v34 = vpop.permute.xlu0 %1312 }
 0x622   : > { %v1315_v35 = vsel %vm982_vm5, %v1140_v27, %v1313_v34 }
 0x623   : > { %2447 = vmatprep.mubr.msk.f32.mxu1 %vm896_vm3, %v1315_v35 }
 0x629   : > { %v1647_v36 = vpop.permute.xlu1 %1646 }
 0x62a   : > { %v1649_v37 = vsel %vm982_vm5, %v1476_v31, %v1647_v36 }
 0x62b   : > { %2448 = vmatmul.mubr.msk.f32.vlgmr.msra.gmra.mrb[8].mxu1 %vm896_vm3, %v1649_v37 }
 0x62c   : > { %2494 = vmatpush3.bf16.msra.mxu1 %v2491_v60  ;;  %v2499_v60 = vpack.c.bf16 (!%p2337_p4), %v2025_v59, %v2024_v58 }
 0x62d   : > { %2496 = vmatprep.subr.bf16.mxu1 %v2495_v15 }
 0x62e   : > { %2500 = vmatprep.subr.bf16.mxu0 (!%p2337_p4), %v2499_v60 }
 0x630   : > { %2498 = vmatpush3.bf16.msra.mxu1 %v2495_v15 }
 0x6fe   : > { %v2449_v39 = vpop.f32.mrb[8].mxu1 }
 0x6ff   : > { %v1737_v40 = vadd.f32 %v2449_v39, %v2324_v38  ;;  %v1731_v41 = vpop.f32.mrb[9].mxu1 }
 0x700   : > { %v1732_v42 = vadd.f32 %v2324_v38, %v1731_v41 }
 0x701   : > { %v1741_v43 = vadd.f32 %v1737_v40, %v3073_v18 }
 0x702   : > { %v1740_v44 = vadd.f32 %v1732_v42, %v3069_v16 }
 0x703   : > { %v1747_v45 = vsel %vm896_vm3, %v1741_v43, 0.0 }
 0x704   : > { %1748 = vadd.xlane.f32.xlu1 %v1747_v45  ;;  %v1744_v46 = vsel %vm896_vm3, %v1740_v44, 0.0 }
 0x705   : > { %1745 = vadd.xlane.f32.xlu0 %v1744_v46 }
 0x791   : > { %v1749_v47 = vpop.xlane.xlu1 %1748 }
 0x792   : > { %v1752_v48 = vmul.f32 0.0625, %v1749_v47  ;;  %v1746_v49 = vpop.xlane.xlu0 %1745 }
 0x793   : > { %v1751_v50 = vmul.f32 0.0625, %v1746_v49 }
 0x794   : > { %v1754_v51 = vsub.f32 %v1741_v43, %v1752_v48 }
 0x795   : > { %v1753_v52 = vsub.f32 %v1740_v44, %v1751_v50 }
 0x796   : > { %v1756_v16 = vmul.f32 %v1754_v51, %v1754_v51 }
 0x797   : > { %v1755_v53 = vmul.f32 %v1753_v52, %v1753_v52 }
 0x798   : > { %v1760_v54 = vsel %vm896_vm3, %v1756_v16, 0.0 }
 0x799   : > { %v1757_v18 = vsel %vm896_vm3, %v1755_v53, 0.0 }
 0x79a   : > { %1758 = vadd.xlane.f32.xlu0 %v1757_v18  ;;  %v2336_v18 = vld [vmem:[%s779_s27] ss:$0 sm:$0xff] }
 0x79e   : > { %1761 = vadd.xlane.f32.xlu0 %v1760_v54 }
 0x827   : > { %v1759_v61 = vpop.xlane.xlu0 %1758 }
 0x828   : > { %v1763_v62 = vmul.f32 0.0625, %v1759_v61  ;;  %v2338_v61 = vld [vmem:[%s3309_s18] ss:$0 sm:$0xff] (!%p2337_p4) }
 0x82a   : > { %v1765_v63 = vadd.f32 1e-05, %v1763_v62 }
 0x82b   : > { %v1762_v0 = vpop.xlane.xlu0 %1761 }
 0x82c   : > { %2589 = vrsqrt.f32 %v1765_v63  ;;  %v1764_v1 = vmul.f32 0.0625, %v1762_v0 }
 0x82e   : > { %v1766_v2 = vadd.f32 1e-05, %v1764_v1 }
 0x830   : > { %2591 = vrsqrt.f32 %v1766_v2 }
 0x836   : > { %v2590_v3 = vpop.eup %2589 }
 0x837   : > { %v1769_v5 = vmul.f32 %v2590_v3, %v1753_v52 }
 0x839   : > { %v1777_v7 = vmul.f32 %v2327_v4, %v1769_v5 }
 0x83a   : > { %v2592_v8 = vpop.eup %2591 }
 0x83b   : > { %v1770_v9 = vmul.f32 %v2592_v8, %v1754_v51  ;;  %v1785_v10 = vadd.f32 %v2328_v6, %v1777_v7  ;;  %v2335_v51 = vld [vmem:[%s776_s22] ss:$0 sm:$0xff] }
 0x83d   : > { %v1778_v11 = vmul.f32 %v2327_v4, %v1770_v9  ;;  %2454 = vmatprep.mubr.msk.f32.mxu0 %vm896_vm3, %v1785_v10 }
 0x83f   : > { %v1786_v12 = vadd.f32 %v2328_v6, %v1778_v11 }
 0x841   : > { %2455 = vmatmul.mubr.msk.f32.vlgmr.msra.gmra.mrb[10].mxu0 %vm896_vm3, %v1786_v12 }
 0x842   : > { %2502 = vmatpush3.bf16.msra.mxu0 (!%p2337_p4), %v2499_v60 }
 0x914   : > { %v2456_v20 = vpop.f32.mrb[10].mxu0 }
 0x915   : > { %v1874_v21 = vadd.f32 %v2456_v20, %v2329_v17  ;;  %v1868_v22 = vpop.f32.mrb[11].mxu0 }
 0x916   : > { %v1869_v23 = vadd.f32 %v2329_v17, %v1868_v22 }
 0x917   : > { %v1878_v25 = vmax.f32 %v1874_v21, 0.0 }
 0x918   : > { %v1877_v24 = vmax.f32 %v1869_v23, 0.0 }
 0x91a   : > { %2465 = vmatprep.mubr.msk.f32.mxu1 %vm1890_vm6, %v1877_v24 }
 0x91b   : > { %2466 = vmatmul.mubr.msk.f32.vlgmr.msra.gmra.mrb[10].mxu1 %vm1890_vm6, %v1878_v25 }
 0x9ee   : > { %v2467_v27 = vpop.f32.mrb[10].mxu1 }
 0x9ef   : > { %v1969_v28 = vadd.f32 %v2467_v27, %v2332_v26  ;;  %v1963_v29 = vpop.f32.mrb[11].mxu1 }
 0x9f0   : > { %v1964_v30 = vadd.f32 %v2332_v26, %v1963_v29 }
 0x9f1   : > { %v1973_v31 = vadd.f32 %v1969_v28, %v1786_v12 }
 0x9f2   : > { %v1972_v32 = vadd.f32 %v1964_v30, %v1785_v10 }
 0x9f3   : > { %v1979_v33 = vsel %vm896_vm3, %v1973_v31, 0.0 }
 0x9f4   : > { %1980 = vadd.xlane.f32.xlu0 %v1979_v33  ;;  %v1976_v19 = vsel %vm896_vm3, %v1972_v32, 0.0 }
 0x9f5   : > { %1977 = vadd.xlane.f32.xlu1 %v1976_v19 }
 0xa81   : > { %v1981_v34 = vpop.xlane.xlu0 %1980 }
 0xa82   : > { %v1983_v35 = vmul.f32 0.0625, %v1981_v34  ;;  %v1978_v36 = vpop.xlane.xlu1 %1977 }
 0xa83   : > { %v1982_v37 = vmul.f32 0.0625, %v1978_v36 }
 0xa84   : > { %v1985_v38 = vsub.f32 %v1973_v31, %v1983_v35 }
 0xa85   : > { %v1984_v39 = vsub.f32 %v1972_v32, %v1982_v37 }
 0xa86   : > { %v1987_v40 = vmul.f32 %v1985_v38, %v1985_v38 }
 0xa87   : > { %v1986_v41 = vmul.f32 %v1984_v39, %v1984_v39 }
 0xa88   : > { %v1991_v42 = vsel %vm896_vm3, %v1987_v40, 0.0 }
 0xa89   : > { %1992 = vadd.xlane.f32.xlu0 %v1991_v42  ;;  %v1988_v43 = vsel %vm896_vm3, %v1986_v41, 0.0 }
 0xa8a   : > { %1989 = vadd.xlane.f32.xlu1 %v1988_v43 }
 0xb16   : > { %v1993_v44 = vpop.xlane.xlu0 %1992 }
 0xb17   : > { %v1995_v45 = vmul.f32 0.0625, %v1993_v44  ;;  %v1990_v46 = vpop.xlane.xlu1 %1989 }
 0xb18   : > { %v1994_v47 = vmul.f32 0.0625, %v1990_v46 }
 0xb19   : > { %v1997_v48 = vadd.f32 1e-05, %v1995_v45 }
 0xb1a   : > { %v1996_v49 = vadd.f32 1e-05, %v1994_v47 }
 0xb1b   : > { %2593 = vrsqrt.f32 %v1997_v48 }
 0xb1c   : > { %2595 = vrsqrt.f32 %v1996_v49 }
 0xb25   : > { %v2594_v50 = vpop.eup %2593 }
 0xb26   : > { %v2596_v52 = vpop.eup %2595  ;;  %v2001_v53 = vmul.f32 %v2594_v50, %v1985_v38 }
 0xb27   : > { %v2000_v16 = vmul.f32 %v2596_v52, %v1984_v39  ;;  %2023 = sbr.rel (%p2337_p4) target bundleno = 3081 (0xc09), region = 112 }
 0xb28   : > { %v2009_v54 = vmul.f32 %v2335_v51, %v2001_v53 }
 0xb29   : > { %v2008_v55 = vmul.f32 %v2335_v51, %v2000_v16 }
 0xb2a   : > { %v2017_v56 = vadd.f32 %v2336_v18, %v2009_v54 }
 0xb2b   : > { %v2016_v57 = vadd.f32 %v2336_v18, %v2008_v55 }
 0xb2c   : > { %2019 = vst.msk [vmem:[#allocation2 + $0x8] sm:$0xff] %vm896_vm3, %v2017_v56 }
 0xb2d   : > { %2018 = vst.msk [vmem:[#allocation2] sm:$0xff] %vm896_vm3, %v2016_v57  ;;  %2472 = vmatprep.mubr.msk.f32.mxu0 (!%p2337_p4), %vm896_vm3, %v2016_v57 }
 0xb2e   : > { %2473 = vmatmul.mubr.msk.f32.vlgmr.msra.gmra.mrb[0].mxu0 %vm896_vm3, %v2017_v56 }
 0xc01   : > { %v2474_v62 = vpop.f32.mrb[0].mxu0 }
 0xc02   : > { %v2111_v63 = vadd.f32 %v2474_v62, %v2338_v61  ;;  %v2105_v0 = vpop.f32.mrb[1].mxu0 }
 0xc03   : > { %v2106_v1 = vadd.f32 %v2338_v61, %v2105_v0 }
 0xc04   : > { %vm2115_vm7 = vcmp.ge.f32.partialorder %v2111_v63, 0.0  ;;  %v2117_v2 = vmul.f32 0.01, %v2111_v63 }
 0xc05   : > { %vm2114_vm8 = vcmp.ge.f32.partialorder %v2106_v1, 0.0  ;;  %v2116_v3 = vmul.f32 0.01, %v2106_v1 }
 0xc06   : > { %v2119_v4 = vsel %vm2115_vm7, %v2111_v63, %v2117_v2 }
 0xc07   : > { %2121 = vst.msk [vmem:[%s3310_s28 + $0x8] sm:$0xff] %vm982_vm5, %v2119_v4  ;;  %v2118_v5 = vsel %vm2114_vm8, %v2106_v1, %v2116_v3 }
 0xc08   : > { %2120 = vst.msk [vmem:[%s3311_s19] sm:$0xff] %vm982_vm5, %v2118_v5 }
 0xc09 PF: > { %s3312_s27 = sld [smem:[#allocation11_spill]]  ;;  %s3313_s28 = sld [smem:[#allocation12_spill]] }
 0xc0a   : > { %s3314_s29 = sld [smem:[#allocation13_spill]]  ;;  %p27_p5 = scmp.ge.s32.totalorder %s2929_s14, 4  }
 0xc0b   : > { %s3315_s30 = smov %s2929_s14 }
 0xc0c   :  { %29 = sbr.rel (!%p27_p5) target bundleno = 17 (0x11), region = 177 }
 0xc13   :  { %2133 = vsyncpa [#allocation4], 1 }
 0xc14   :  { %2135 = vsyncpa [#allocation4 + $0x1], 1 }
 0xc15   :  { %2136 = vsyncpa [#allocation6], 1 }

</bundles_post_ra>
